<compile_context>
chip_gen: v7x
topology: tpu7x:2x2x1
jax: 0.10.0
libtpu: 0.0.40
codegen_flags: <defaults>
</compile_context>

<pallas_src>
import functools
import math

import jax
import jax.numpy as jnp
from jax.experimental import pallas as pl
from jax.experimental.pallas import tpu as pltpu


def _gelu(x):
    # exact (erf-based) GELU, matching torch.nn.GELU(approximate='none')
    return 0.5 * x * (1.0 + jax.lax.erf(x * (1.0 / math.sqrt(2.0))))


def _lff_kernel(x_ref, w1_ref, wdw_ref, weca_ref, w2_ref, o_ref, *, H, W, k, ipb):
    """One group of `ipb` images per grid step.

    x_ref:    (C, ipb*H*W) f32   channels on sublanes, image-major spatial lanes
    w1_ref:   (hid, C)     bf16  project_in 1x1 conv weight
    wdw_ref:  (hid, 9)     f32   depthwise 3x3 weights, tap index (dy+1)*3+(dx+1)
    weca_ref: (1, k)       f32   ECA 1D channel-conv taps
    w2_ref:   (C, hid)     bf16  project_out 1x1 conv weight
    o_ref:    (C, ipb*H*W) f32   output
    """
    HW = H * W
    L = ipb * HW
    hid = w1_ref.shape[0]

    x = x_ref[...]                                           # (C, L) f32

    # --- project_in: 1x1 conv == (hid, C) @ (C, L) on the MXU ---------------
    # TODO(synk): for real model dims pad C/hid toward the MXU contraction
    #             depth (128 v5e / 256 v6e+); at tiny C the MXU is underfilled
    #             but the absolute cost is negligible.
    x1 = _gelu(jnp.dot(w1_ref[...], x.astype(jnp.bfloat16),
                       preferred_element_type=jnp.float32))    # (hid, L) f32

    # --- depthwise 3x3 (stride 1, pad 1, groups=hid) + GELU -----------------
    # Separable roll scheme: 2 column rolls + 2 row rolls, 4 selects total.
    lane = jax.lax.broadcasted_iota(jnp.int32, (1, L), 1)
    pos = lane % HW            # position inside the image
    col = lane % W             # column inside the row (W divides HW)

    wdw = wdw_ref[...]                                        # (hid, 9) f32

    # column-shifted copies, masked so they never cross a row / image boundary
    xl = jnp.where(col >= 1, pltpu.roll(x1, shift=1, axis=1), 0.0)            # x1[q-1]
    xr = jnp.where(col < W - 1, pltpu.roll(x1, shift=(L - 1) % L, axis=1), 0.0)  # x1[q+1]

    def dw_row_partial(dy):
        base = (dy + 1) * 3
        return (xl * wdw[:, base + 0:base + 1]
                + x1 * wdw[:, base + 1:base + 2]
                + xr * wdw[:, base + 2:base + 3])

    p_m1 = dw_row_partial(-1)
    p_00 = dw_row_partial(0)
    p_p1 = dw_row_partial(1)

    acc = p_00
    acc = acc + jnp.where(pos >= W,
                          pltpu.roll(p_m1, shift=W % L, axis=1), 0.0)
    acc = acc + jnp.where(pos < (H - 1) * W,
                          pltpu.roll(p_p1, shift=(L - W) % L, axis=1), 0.0)
    x2 = _gelu(acc)                                           # (hid, L) f32

    # --- ECA: per-image avg pool (lane reduce) -> k-tap channel conv -> gate --
    segs = [x2[:, i * HW:(i + 1) * HW] for i in range(ipb)]   # lane-aligned slices
    pooled = jnp.concatenate(
        [jnp.sum(seg, axis=-1, keepdims=True) for seg in segs],
        axis=-1) * (1.0 / HW)                                 # (hid, ipb) f32

    weca = weca_ref[...]                                      # (1, k) f32
    pad = (k - 1) // 2
    chan = jax.lax.broadcasted_iota(jnp.int32, (hid, ipb), 0)
    gate = jnp.zeros((hid, ipb), jnp.float32)
    for j in range(k):
        sft = j - pad
        if sft == 0:
            sp = pooled
        else:
            # sp[c] = pooled[c + sft], zero where out of range
            sp = pltpu.roll(pooled, shift=(-sft) % hid, axis=0)
            if sft > 0:
                sp = jnp.where(chan < hid - sft, sp, 0.0)
            else:
                sp = jnp.where(chan >= -sft, sp, 0.0)
        gate = gate + sp * weca[:, j:j + 1]
    gate = jax.nn.sigmoid(gate)                               # (hid, ipb)

    x3 = jnp.concatenate([seg * gate[:, i:i + 1] for i, seg in enumerate(segs)],
                         axis=-1)                             # (hid, L)

    # --- project_out: (C, hid) @ (hid, L) + GELU, then residual --------------
    y = _gelu(jnp.dot(w2_ref[...], x3.astype(jnp.bfloat16),
                      preferred_element_type=jnp.float32))     # (C, L) f32
    o_ref[...] = x + y


def init_params(key, dim, hidden_dim):
    """Deterministic synthetic parameters with the module's shapes."""
    k1, k2, k3, k4 = jax.random.split(key, 4)
    # Conv2d(dim, hidden, 1, bias=False)       -> (hidden, dim), stored bf16
    w1 = (jax.random.normal(k1, (hidden_dim, dim), jnp.float32)
          / math.sqrt(dim)).astype(jnp.bfloat16)
    # Conv2d(hidden, hidden, 3, groups=hidden) -> (hidden, 9), f32
    wdw = jax.random.normal(k2, (hidden_dim, 9), jnp.float32) / 3.0
    # Conv2d(hidden, dim, 1, bias=False)       -> (dim, hidden), stored bf16
    w2 = (jax.random.normal(k3, (dim, hidden_dim), jnp.float32)
          / math.sqrt(hidden_dim)).astype(jnp.bfloat16)
    # ECA kernel size exactly as in ECALayer.__init__ (channel = hidden_dim)
    t = int(abs((math.log(hidden_dim, 2) + 1) / 2))
    k = t if t % 2 else t + 1
    w_eca = jax.random.normal(k4, (1, k), jnp.float32) / k
    return dict(w1=w1, wdw=wdw, w_eca=w_eca, w2=w2)


def _choose_images_per_block(B, HW, C, hid, budget_bytes=24 << 20):
    """Largest divisor of B whose per-block f32 working set fits the budget."""
    best = 1
    for ipb in range(1, B + 1):
        if B % ipb:
            continue
        # rough footprint: double-buffered in/out blocks + live (hid, L) temps
        est = (4 * C + 8 * hid) * ipb * HW * 4
        if est <= budget_bytes:
            best = ipb
    return best


@jax.jit
def locality_feed_forward(x_nchw, params):
    """NCHW in, NCHW out — same contract as the PyTorch module."""
    B, C, H, W = x_nchw.shape
    hid = params['w1'].shape[0]
    k = params['w_eca'].shape[1]
    HW = H * W

    ipb = _choose_images_per_block(B, HW, C, hid)
    if (ipb * HW) % 128 != 0:
        ipb = B        # one full-width block (block == full array is allowed)

    # channels on sublanes, image-major flattened spatial on lanes
    x_cl = jnp.transpose(x_nchw.reshape(B, C, HW), (1, 0, 2)).reshape(C, B * HW)

    kern = functools.partial(_lff_kernel, H=H, W=W, k=k, ipb=ipb)
    out_cl = pl.pallas_call(
        kern,
        out_shape=jax.ShapeDtypeStruct((C, B * HW), jnp.float32),
        grid_spec=pltpu.PrefetchScalarGridSpec(
            num_scalar_prefetch=0,
            grid=(B // ipb,),
            in_specs=[
                pl.BlockSpec((C, ipb * HW), lambda b: (0, b)),
                pl.BlockSpec((hid, C), lambda b: (0, 0)),
                pl.BlockSpec((hid, 9), lambda b: (0, 0)),
                pl.BlockSpec((1, k), lambda b: (0, 0)),
                pl.BlockSpec((C, hid), lambda b: (0, 0)),
            ],
            out_specs=pl.BlockSpec((C, ipb * HW), lambda b: (0, b)),
        ),
        compiler_params=pltpu.CompilerParams(
            dimension_semantics=("parallel",),
            vmem_limit_bytes=64 * 1024 * 1024,
        ),
        input_output_aliases={0: 0},
    )(x_cl, params['w1'], params['wdw'], params['w_eca'], params['w2'])

    return jnp.transpose(out_cl.reshape(C, B, HW), (1, 0, 2)).reshape(B, C, H, W)


def _reference(x_nchw, params):
    """Pure-JAX reference of the same forward (bf16 matmul operands mimicked)."""
    B, C, H, W = x_nchw.shape
    w1, wdw, w2 = params['w1'], params['wdw'], params['w2']
    w_eca = params['w_eca'][0]
    hid = w1.shape[0]
    k = w_eca.shape[0]
    pad = (k - 1) // 2

    x = x_nchw.astype(jnp.float32)
    x1 = _gelu(jnp.einsum('hc,bcyx->bhyx', w1, x.astype(jnp.bfloat16),
                          preferred_element_type=jnp.float32))
    xp = jnp.pad(x1, ((0, 0), (0, 0), (1, 1), (1, 1)))
    x2 = jnp.zeros_like(x1)
    for dy in (-1, 0, 1):
        for dx in (-1, 0, 1):
            widx = (dy + 1) * 3 + (dx + 1)
            tap = wdw[:, widx].reshape(1, hid, 1, 1)
            x2 = x2 + xp[:, :, 1 + dy:1 + dy + H, 1 + dx:1 + dx + W] * tap
    x2 = _gelu(x2)
    pooled = jnp.mean(x2, axis=(2, 3))                      # (B, hid)
    pp = jnp.pad(pooled, ((0, 0), (pad, pad)))
    gate = jnp.zeros_like(pooled)
    for j in range(k):
        gate = gate + w_eca[j] * pp[:, j:j + hid]
    x3 = x2 * jax.nn.sigmoid(gate)[:, :, None, None]
    y = _gelu(jnp.einsum('ch,bhyx->bcyx', w2, x3.astype(jnp.bfloat16),
                         preferred_element_type=jnp.float32))
    return x + y


if __name__ == "__main__":
    key = jax.random.PRNGKey(0)
    kx, kp = jax.random.split(key)

    B, dim, hidden_dim, H, W = 2, 8, 32, 16, 16
    x = jax.random.normal(kx, (B, dim, H, W), jnp.float32)
    params = init_params(kp, dim, hidden_dim)

    y = locality_feed_forward(x, params)
    jax.block_until_ready(y)
    assert y.shape == (B, dim, H, W) and y.dtype == jnp.float32

    y_ref = _reference(x, params)
    max_err = float(jnp.max(jnp.abs(y - y_ref)))
    assert jnp.allclose(y, y_ref, atol=1e-2, rtol=1e-2), max_err

    print("KERNEL_OK")
</pallas_src>

<mosaic_0001>
module attributes {stable_mosaic.version = 11 : i64} {
  func.func @_lff_kernel(%arg0: i32, %arg1: memref<8x512xf32, #tpu.memory_space<vmem>>, %arg2: memref<32x8xbf16, #tpu.memory_space<vmem>>, %arg3: memref<32x9xf32, #tpu.memory_space<vmem>>, %arg4: memref<1x3xf32, #tpu.memory_space<vmem>>, %arg5: memref<8x32xbf16, #tpu.memory_space<vmem>>, %arg6: memref<8x512xf32, #tpu.memory_space<vmem>>) attributes {dimension_semantics = [#tpu.dimension_semantics<parallel>], iteration_bounds = array<i64: 1>, scalar_prefetch = 0 : i64, scratch_operands = 0 : i64, tpu.core_type = #tpu.core_type<tc>, window_params = [{transform_indices = @transform_0, window_bounds = array<i64: 8, 512>}, {pipeline_mode = #tpu.pipeline_mode<synchronous>, transform_indices = @transform_1, window_bounds = array<i64: 32, 8>}, {pipeline_mode = #tpu.pipeline_mode<synchronous>, transform_indices = @transform_2, window_bounds = array<i64: 32, 9>}, {pipeline_mode = #tpu.pipeline_mode<synchronous>, transform_indices = @transform_3, window_bounds = array<i64: 1, 3>}, {pipeline_mode = #tpu.pipeline_mode<synchronous>, transform_indices = @transform_4, window_bounds = array<i64: 8, 32>}, {transform_indices = @transform_5, window_bounds = array<i64: 8, 512>}]} {
    %c0 = arith.constant 0 : index
    %c0_0 = arith.constant 0 : index
    %0 = vector.load %arg1[%c0, %c0_0] : memref<8x512xf32, #tpu.memory_space<vmem>>, vector<8x512xf32>
    %c0_1 = arith.constant 0 : index
    %c0_2 = arith.constant 0 : index
    %1 = vector.load %arg2[%c0_1, %c0_2] : memref<32x8xbf16, #tpu.memory_space<vmem>>, vector<32x8xbf16>
    %2 = arith.truncf %0 : vector<8x512xf32> to vector<8x512xbf16>
    %cst = arith.constant dense<0.000000e+00> : vector<32x512xf32>
    %3 = tpu.matmul %1, %2, %cst {dimension_numbers = #tpu.dot_dimension_numbers<[1], [0], [0], [1], [0, 0, 1, 1], [], []>} : vector<32x8xbf16>, vector<8x512xbf16>, vector<32x512xf32> -> vector<32x512xf32>
    %cst_3 = arith.constant 5.000000e-01 : f32
    %4 = vector.broadcast %cst_3 : f32 to vector<32x512xf32>
    %5 = arith.mulf %4, %3 : vector<32x512xf32>
    %cst_4 = arith.constant 0.707106769 : f32
    %6 = vector.broadcast %cst_4 : f32 to vector<32x512xf32>
    %7 = arith.mulf %3, %6 : vector<32x512xf32>
    %8 = math.erf %7 : vector<32x512xf32>
    %cst_5 = arith.constant 1.000000e+00 : f32
    %9 = vector.broadcast %cst_5 : f32 to vector<32x512xf32>
    %10 = arith.addf %9, %8 : vector<32x512xf32>
    %11 = arith.mulf %5, %10 : vector<32x512xf32>
    %12 = tpu.iota {dimensions = array<i32: 1>} : vector<1x512xi32>
    %c256_i32 = arith.constant 256 : i32
    %c0_i32 = arith.constant 0 : i32
    %13 = arith.cmpi eq, %c256_i32, %c0_i32 : i32
    %c1_i32 = arith.constant 1 : i32
    %14 = arith.select %13, %c1_i32, %c256_i32 : i32
    %15 = vector.broadcast %14 : i32 to vector<1x512xi32>
    %16 = arith.remsi %12, %15 : vector<1x512xi32>
    %c0_i32_6 = arith.constant 0 : i32
    %17 = vector.broadcast %c0_i32_6 : i32 to vector<1x512xi32>
    %18 = arith.cmpi ne, %16, %17 : vector<1x512xi32>
    %c0_i32_7 = arith.constant 0 : i32
    %19 = vector.broadcast %c0_i32_7 : i32 to vector<1x512xi32>
    %20 = arith.cmpi slt, %16, %19 : vector<1x512xi32>
    %c0_i32_8 = arith.constant 0 : i32
    %21 = arith.cmpi slt, %14, %c0_i32_8 : i32
    %22 = vector.broadcast %21 : i1 to vector<1x512xi1>
    %23 = vector.broadcast %22 : vector<1x512xi1> to vector<1x512xi1>
    %24 = arith.xori %20, %23 : vector<1x512xi1>
    %25 = arith.andi %24, %18 : vector<1x512xi1>
    %26 = vector.broadcast %14 : i32 to vector<1x512xi32>
    %27 = arith.addi %16, %26 : vector<1x512xi32>
    %28 = arith.select %25, %27, %16 : vector<1x512xi1>, vector<1x512xi32>
    %c16_i32 = arith.constant 16 : i32
    %c0_i32_9 = arith.constant 0 : i32
    %29 = arith.cmpi eq, %c16_i32, %c0_i32_9 : i32
    %c1_i32_10 = arith.constant 1 : i32
    %30 = arith.select %29, %c1_i32_10, %c16_i32 : i32
    %31 = vector.broadcast %30 : i32 to vector<1x512xi32>
    %32 = arith.remsi %12, %31 : vector<1x512xi32>
    %c0_i32_11 = arith.constant 0 : i32
    %33 = vector.broadcast %c0_i32_11 : i32 to vector<1x512xi32>
    %34 = arith.cmpi ne, %32, %33 : vector<1x512xi32>
    %c0_i32_12 = arith.constant 0 : i32
    %35 = vector.broadcast %c0_i32_12 : i32 to vector<1x512xi32>
    %36 = arith.cmpi slt, %32, %35 : vector<1x512xi32>
    %c0_i32_13 = arith.constant 0 : i32
    %37 = arith.cmpi slt, %30, %c0_i32_13 : i32
    %38 = vector.broadcast %37 : i1 to vector<1x512xi1>
    %39 = vector.broadcast %38 : vector<1x512xi1> to vector<1x512xi1>
    %40 = arith.xori %36, %39 : vector<1x512xi1>
    %41 = arith.andi %40, %34 : vector<1x512xi1>
    %42 = vector.broadcast %30 : i32 to vector<1x512xi32>
    %43 = arith.addi %32, %42 : vector<1x512xi32>
    %44 = arith.select %41, %43, %32 : vector<1x512xi1>, vector<1x512xi32>
    %c0_14 = arith.constant 0 : index
    %c0_15 = arith.constant 0 : index
    %45 = vector.load %arg3[%c0_14, %c0_15] : memref<32x9xf32, #tpu.memory_space<vmem>>, vector<32x9xf32>
    %c1_i32_16 = arith.constant 1 : i32
    %46 = vector.broadcast %c1_i32_16 : i32 to vector<1x512xi32>
    %47 = arith.cmpi sge, %44, %46 : vector<1x512xi32>
    %c1_i32_17 = arith.constant 1 : i32
    %48 = tpu.dynamic_rotate %11 by %c1_i32_17 dim 1 : vector<32x512xf32>, i32 -> vector<32x512xf32>
    %cst_18 = arith.constant 0.000000e+00 : f32
    %49 = vector.shape_cast %47 : vector<1x512xi1> to vector<1x512xi1>
    %50 = vector.broadcast %49 : vector<1x512xi1> to vector<32x512xi1>
    %51 = vector.broadcast %cst_18 : f32 to vector<32x512xf32>
    %52 = arith.select %50, %48, %51 : vector<32x512xi1>, vector<32x512xf32>
    %c15_i32 = arith.constant 15 : i32
    %53 = vector.broadcast %c15_i32 : i32 to vector<1x512xi32>
    %54 = arith.cmpi slt, %44, %53 : vector<1x512xi32>
    %c511_i32 = arith.constant 511 : i32
    %55 = tpu.dynamic_rotate %11 by %c511_i32 dim 1 : vector<32x512xf32>, i32 -> vector<32x512xf32>
    %cst_19 = arith.constant 0.000000e+00 : f32
    %56 = vector.shape_cast %54 : vector<1x512xi1> to vector<1x512xi1>
    %57 = vector.broadcast %56 : vector<1x512xi1> to vector<32x512xi1>
    %58 = vector.broadcast %cst_19 : f32 to vector<32x512xf32>
    %59 = arith.select %57, %55, %58 : vector<32x512xi1>, vector<32x512xf32>
    %60 = vector.extract_strided_slice %45 {offsets = [0, 0], sizes = [32, 1], strides = [1, 1]} : vector<32x9xf32> to vector<32x1xf32>
    %61 = vector.broadcast %60 : vector<32x1xf32> to vector<32x512xf32>
    %62 = arith.mulf %52, %61 : vector<32x512xf32>
    %63 = vector.extract_strided_slice %45 {offsets = [0, 1], sizes = [32, 1], strides = [1, 1]} : vector<32x9xf32> to vector<32x1xf32>
    %64 = vector.broadcast %63 : vector<32x1xf32> to vector<32x512xf32>
    %65 = arith.mulf %11, %64 : vector<32x512xf32>
    %66 = arith.addf %62, %65 : vector<32x512xf32>
    %67 = vector.extract_strided_slice %45 {offsets = [0, 2], sizes = [32, 1], strides = [1, 1]} : vector<32x9xf32> to vector<32x1xf32>
    %68 = vector.broadcast %67 : vector<32x1xf32> to vector<32x512xf32>
    %69 = arith.mulf %59, %68 : vector<32x512xf32>
    %70 = arith.addf %66, %69 : vector<32x512xf32>
    %71 = vector.extract_strided_slice %45 {offsets = [0, 3], sizes = [32, 1], strides = [1, 1]} : vector<32x9xf32> to vector<32x1xf32>
    %72 = vector.broadcast %71 : vector<32x1xf32> to vector<32x512xf32>
    %73 = arith.mulf %52, %72 : vector<32x512xf32>
    %74 = vector.extract_strided_slice %45 {offsets = [0, 4], sizes = [32, 1], strides = [1, 1]} : vector<32x9xf32> to vector<32x1xf32>
    %75 = vector.broadcast %74 : vector<32x1xf32> to vector<32x512xf32>
    %76 = arith.mulf %11, %75 : vector<32x512xf32>
    %77 = arith.addf %73, %76 : vector<32x512xf32>
    %78 = vector.extract_strided_slice %45 {offsets = [0, 5], sizes = [32, 1], strides = [1, 1]} : vector<32x9xf32> to vector<32x1xf32>
    %79 = vector.broadcast %78 : vector<32x1xf32> to vector<32x512xf32>
    %80 = arith.mulf %59, %79 : vector<32x512xf32>
    %81 = arith.addf %77, %80 : vector<32x512xf32>
    %82 = vector.extract_strided_slice %45 {offsets = [0, 6], sizes = [32, 1], strides = [1, 1]} : vector<32x9xf32> to vector<32x1xf32>
    %83 = vector.broadcast %82 : vector<32x1xf32> to vector<32x512xf32>
    %84 = arith.mulf %52, %83 : vector<32x512xf32>
    %85 = vector.extract_strided_slice %45 {offsets = [0, 7], sizes = [32, 1], strides = [1, 1]} : vector<32x9xf32> to vector<32x1xf32>
    %86 = vector.broadcast %85 : vector<32x1xf32> to vector<32x512xf32>
    %87 = arith.mulf %11, %86 : vector<32x512xf32>
    %88 = arith.addf %84, %87 : vector<32x512xf32>
    %89 = vector.extract_strided_slice %45 {offsets = [0, 8], sizes = [32, 1], strides = [1, 1]} : vector<32x9xf32> to vector<32x1xf32>
    %90 = vector.broadcast %89 : vector<32x1xf32> to vector<32x512xf32>
    %91 = arith.mulf %59, %90 : vector<32x512xf32>
    %92 = arith.addf %88, %91 : vector<32x512xf32>
    %c16_i32_20 = arith.constant 16 : i32
    %93 = vector.broadcast %c16_i32_20 : i32 to vector<1x512xi32>
    %94 = arith.cmpi sge, %28, %93 : vector<1x512xi32>
    %c16_i32_21 = arith.constant 16 : i32
    %95 = tpu.dynamic_rotate %70 by %c16_i32_21 dim 1 : vector<32x512xf32>, i32 -> vector<32x512xf32>
    %cst_22 = arith.constant 0.000000e+00 : f32
    %96 = vector.shape_cast %94 : vector<1x512xi1> to vector<1x512xi1>
    %97 = vector.broadcast %96 : vector<1x512xi1> to vector<32x512xi1>
    %98 = vector.broadcast %cst_22 : f32 to vector<32x512xf32>
    %99 = arith.select %97, %95, %98 : vector<32x512xi1>, vector<32x512xf32>
    %100 = arith.addf %81, %99 : vector<32x512xf32>
    %c240_i32 = arith.constant 240 : i32
    %101 = vector.broadcast %c240_i32 : i32 to vector<1x512xi32>
    %102 = arith.cmpi slt, %28, %101 : vector<1x512xi32>
    %c496_i32 = arith.constant 496 : i32
    %103 = tpu.dynamic_rotate %92 by %c496_i32 dim 1 : vector<32x512xf32>, i32 -> vector<32x512xf32>
    %cst_23 = arith.constant 0.000000e+00 : f32
    %104 = vector.shape_cast %102 : vector<1x512xi1> to vector<1x512xi1>
    %105 = vector.broadcast %104 : vector<1x512xi1> to vector<32x512xi1>
    %106 = vector.broadcast %cst_23 : f32 to vector<32x512xf32>
    %107 = arith.select %105, %103, %106 : vector<32x512xi1>, vector<32x512xf32>
    %108 = arith.addf %100, %107 : vector<32x512xf32>
    %cst_24 = arith.constant 5.000000e-01 : f32
    %109 = vector.broadcast %cst_24 : f32 to vector<32x512xf32>
    %110 = arith.mulf %109, %108 : vector<32x512xf32>
    %cst_25 = arith.constant 0.707106769 : f32
    %111 = vector.broadcast %cst_25 : f32 to vector<32x512xf32>
    %112 = arith.mulf %108, %111 : vector<32x512xf32>
    %113 = math.erf %112 : vector<32x512xf32>
    %cst_26 = arith.constant 1.000000e+00 : f32
    %114 = vector.broadcast %cst_26 : f32 to vector<32x512xf32>
    %115 = arith.addf %114, %113 : vector<32x512xf32>
    %116 = arith.mulf %110, %115 : vector<32x512xf32>
    %117 = vector.extract_strided_slice %116 {offsets = [0, 0], sizes = [32, 256], strides = [1, 1]} : vector<32x512xf32> to vector<32x256xf32>
    %118 = vector.extract_strided_slice %116 {offsets = [0, 256], sizes = [32, 256], strides = [1, 1]} : vector<32x512xf32> to vector<32x256xf32>
    %cst_27 = arith.constant dense<0.000000e+00> : vector<32xf32>
    %119 = vector.multi_reduction <add>, %117, %cst_27 [1] : vector<32x256xf32> to vector<32xf32>
    %120 = vector.shape_cast %119 : vector<32xf32> to vector<32x1xf32>
    %cst_28 = arith.constant dense<0.000000e+00> : vector<32xf32>
    %121 = vector.multi_reduction <add>, %118, %cst_28 [1] : vector<32x256xf32> to vector<32xf32>
    %122 = vector.shape_cast %121 : vector<32xf32> to vector<32x1xf32>
    %123 = tpu.concatenate %120, %122 in 1 : vector<32x1xf32>, vector<32x1xf32> -> vector<32x2xf32>
    %cst_29 = arith.constant 3.906250e-03 : f32
    %124 = vector.broadcast %cst_29 : f32 to vector<32x2xf32>
    %125 = arith.mulf %123, %124 : vector<32x2xf32>
    %c0_30 = arith.constant 0 : index
    %c0_31 = arith.constant 0 : index
    %126 = vector.load %arg4[%c0_30, %c0_31] : memref<1x3xf32, #tpu.memory_space<vmem>>, vector<1x3xf32>
    %127 = tpu.iota {dimensions = array<i32: 0>} : vector<32x2xi32>
    %cst_32 = arith.constant 0.000000e+00 : f32
    %128 = vector.broadcast %cst_32 : f32 to vector<32x2xf32>
    %c1_i32_33 = arith.constant 1 : i32
    %129 = tpu.dynamic_rotate %125 by %c1_i32_33 dim 0 : vector<32x2xf32>, i32 -> vector<32x2xf32>
    %c1_i32_34 = arith.constant 1 : i32
    %130 = vector.broadcast %c1_i32_34 : i32 to vector<32x2xi32>
    %131 = arith.cmpi sge, %127, %130 : vector<32x2xi32>
    %cst_35 = arith.constant 0.000000e+00 : f32
    %132 = vector.broadcast %cst_35 : f32 to vector<32x2xf32>
    %133 = arith.select %131, %129, %132 : vector<32x2xi1>, vector<32x2xf32>
    %134 = vector.extract_strided_slice %126 {offsets = [0, 0], sizes = [1, 1], strides = [1, 1]} : vector<1x3xf32> to vector<1x1xf32>
    %135 = vector.broadcast %134 : vector<1x1xf32> to vector<32x2xf32>
    %136 = arith.mulf %133, %135 : vector<32x2xf32>
    %137 = arith.addf %128, %136 : vector<32x2xf32>
    %138 = vector.extract_strided_slice %126 {offsets = [0, 1], sizes = [1, 1], strides = [1, 1]} : vector<1x3xf32> to vector<1x1xf32>
    %139 = vector.broadcast %138 : vector<1x1xf32> to vector<32x2xf32>
    %140 = arith.mulf %125, %139 : vector<32x2xf32>
    %141 = arith.addf %137, %140 : vector<32x2xf32>
    %c31_i32 = arith.constant 31 : i32
    %142 = tpu.dynamic_rotate %125 by %c31_i32 dim 0 : vector<32x2xf32>, i32 -> vector<32x2xf32>
    %c31_i32_36 = arith.constant 31 : i32
    %143 = vector.broadcast %c31_i32_36 : i32 to vector<32x2xi32>
    %144 = arith.cmpi slt, %127, %143 : vector<32x2xi32>
    %cst_37 = arith.constant 0.000000e+00 : f32
    %145 = vector.broadcast %cst_37 : f32 to vector<32x2xf32>
    %146 = arith.select %144, %142, %145 : vector<32x2xi1>, vector<32x2xf32>
    %147 = vector.extract_strided_slice %126 {offsets = [0, 2], sizes = [1, 1], strides = [1, 1]} : vector<1x3xf32> to vector<1x1xf32>
    %148 = vector.broadcast %147 : vector<1x1xf32> to vector<32x2xf32>
    %149 = arith.mulf %146, %148 : vector<32x2xf32>
    %150 = arith.addf %141, %149 : vector<32x2xf32>
    %151 = arith.negf %150 : vector<32x2xf32>
    %152 = math.exp %151 : vector<32x2xf32>
    %cst_38 = arith.constant 1.000000e+00 : f32
    %153 = vector.broadcast %cst_38 : f32 to vector<32x2xf32>
    %154 = arith.addf %153, %152 : vector<32x2xf32>
    %155 = arith.divf %153, %154 : vector<32x2xf32>
    %156 = vector.extract_strided_slice %155 {offsets = [0, 0], sizes = [32, 1], strides = [1, 1]} : vector<32x2xf32> to vector<32x1xf32>
    %157 = vector.broadcast %156 : vector<32x1xf32> to vector<32x256xf32>
    %158 = arith.mulf %117, %157 : vector<32x256xf32>
    %159 = vector.extract_strided_slice %155 {offsets = [0, 1], sizes = [32, 1], strides = [1, 1]} : vector<32x2xf32> to vector<32x1xf32>
    %160 = vector.broadcast %159 : vector<32x1xf32> to vector<32x256xf32>
    %161 = arith.mulf %118, %160 : vector<32x256xf32>
    %162 = tpu.concatenate %158, %161 in 1 : vector<32x256xf32>, vector<32x256xf32> -> vector<32x512xf32>
    %c0_39 = arith.constant 0 : index
    %c0_40 = arith.constant 0 : index
    %163 = vector.load %arg5[%c0_39, %c0_40] : memref<8x32xbf16, #tpu.memory_space<vmem>>, vector<8x32xbf16>
    %164 = arith.truncf %162 : vector<32x512xf32> to vector<32x512xbf16>
    %cst_41 = arith.constant dense<0.000000e+00> : vector<8x512xf32>
    %165 = tpu.matmul %163, %164, %cst_41 {dimension_numbers = #tpu.dot_dimension_numbers<[1], [0], [0], [1], [0, 0, 1, 1], [], []>} : vector<8x32xbf16>, vector<32x512xbf16>, vector<8x512xf32> -> vector<8x512xf32>
    %cst_42 = arith.constant 5.000000e-01 : f32
    %166 = vector.broadcast %cst_42 : f32 to vector<8x512xf32>
    %167 = arith.mulf %166, %165 : vector<8x512xf32>
    %cst_43 = arith.constant 0.707106769 : f32
    %168 = vector.broadcast %cst_43 : f32 to vector<8x512xf32>
    %169 = arith.mulf %165, %168 : vector<8x512xf32>
    %170 = math.erf %169 : vector<8x512xf32>
    %cst_44 = arith.constant 1.000000e+00 : f32
    %171 = vector.broadcast %cst_44 : f32 to vector<8x512xf32>
    %172 = arith.addf %171, %170 : vector<8x512xf32>
    %173 = arith.mulf %167, %172 : vector<8x512xf32>
    %174 = arith.addf %0, %173 : vector<8x512xf32>
    %c0_45 = arith.constant 0 : index
    %c0_46 = arith.constant 0 : index
    %175 = vector.load %arg6[%c0_45, %c0_46] : memref<8x512xf32, #tpu.memory_space<vmem>>, vector<8x512xf32>
    tpu.vector_store %arg6[%c0_45, %c0_46], %174 {strides = array<i32>} : memref<8x512xf32, #tpu.memory_space<vmem>>, vector<8x512xf32>,
    return
  }
  func.func @transform_0(%arg0: i32) -> (i32, i32) {
    %c0_i32 = arith.constant 0 : i32
    %c0_i32_0 = arith.constant 0 : i32
    return %c0_i32, %arg0 : i32, i32
  }
  func.func @transform_1(%arg0: i32) -> (i32, i32) {
    %c0_i32 = arith.constant 0 : i32
    %c0_i32_0 = arith.constant 0 : i32
    %c0_i32_1 = arith.constant 0 : i32
    return %c0_i32, %c0_i32_0 : i32, i32
  }
  func.func @transform_2(%arg0: i32) -> (i32, i32) {
    %c0_i32 = arith.constant 0 : i32
    %c0_i32_0 = arith.constant 0 : i32
    %c0_i32_1 = arith.constant 0 : i32
    return %c0_i32, %c0_i32_0 : i32, i32
  }
  func.func @transform_3(%arg0: i32) -> (i32, i32) {
    %c0_i32 = arith.constant 0 : i32
    %c0_i32_0 = arith.constant 0 : i32
    %c0_i32_1 = arith.constant 0 : i32
    return %c0_i32, %c0_i32_0 : i32, i32
  }
  func.func @transform_4(%arg0: i32) -> (i32, i32) {
    %c0_i32 = arith.constant 0 : i32
    %c0_i32_0 = arith.constant 0 : i32
    %c0_i32_1 = arith.constant 0 : i32
    return %c0_i32, %c0_i32_0 : i32, i32
  }
  func.func @transform_5(%arg0: i32) -> (i32, i32) {
    %c0_i32 = arith.constant 0 : i32
    %c0_i32_0 = arith.constant 0 : i32
    return %c0_i32, %arg0 : i32, i32
  }
}

</mosaic_0001>

<bundles_post_ra>
// kernel: locality_feed_forward.1
= control target key start
LH: loop header
LB: loop body
LE: loop exit
PB: predicated region body
PF: predicated region fallthrough
CT: control target
= control target key end

     0   :  { %10 = vsyncpa [#allocation3], 0  ;;  %s3219_s0 = inlined_call_operand.hbm [shape: f32[8,512], index: 0, kind: input, shape index: {}, may-alias: {0,5}]   ;;  %s3220_s1 = inlined_call_operand.hbm [shape: bf16[32,8], index: 1, kind: input, shape index: {}]   ;;  %s3221_s2 = inlined_call_operand.hbm [shape: f32[32,9], index: 2, kind: input, shape index: {}]   ;;  %s3222_s3 = inlined_call_operand.hbm [shape: f32[1,3], index: 3, kind: input, shape index: {}]   ;;  %s3223_s4 = inlined_call_operand.hbm [shape: bf16[8,32], index: 4, kind: input, shape index: {}]   ;;  %s3224_s5 = inlined_call_operand.hbm [shape: f32[8,512], index: 5, kind: output, shape index: {}, may-alias: {0,5}]  }
   0x1   :  { %11 = vsyncpa [#allocation6], 0 }
   0x2   :  { %12 = vsyncpa [#allocation9], 0 }
   0x3   :  { %13 = vsyncpa [#allocation4], 0  ;;  %s1856_s18 = smov [#allocation5]   ;;  %s1716_s22 = scalar_lea.hbm %s3220_s1, 256 }
   0x4   :  { %s29_s19 = sshll.u32 %s1856_s18, 4  ;;  %p1717_p0 = scmp.ne.s32.totalorder %s3220_s1, %s1716_s22  ;;  %s30_s19 = int_to_ptr.vmem [resolvable:$true] %s29_s19 }
   0x5   :  { %p1720_p1 = scmp.lt.u32.totalorder %s1716_s22, %s3220_s1 }
   0x7   :  { %p1722_p2 = pnand %p1720_p1, %p1717_p0 }
   0x9   :  { %1725 = shalt.err (!%p1722_p2)
}
   0xa   :  { %s1726_s27 = scalar_lea.vmem %s30_s19, 256  ;;  %p1731_p4 = scmp.lt.s32.totalorder %s30_s19, %s30_s19 }
   0xb   :  { %p1727_p3 = scmp.ne.s32.totalorder %s30_s19, %s1726_s27  ;;  %p1732_p5 = scmp.lt.s32.totalorder %s1726_s27, %s1726_s27 }
   0xd   :  { %p1733_p6 = por %p1732_p5, %p1731_p4 }
   0xf   :  { %p1734_p7 = pnand %p1733_p6, %p1727_p3 }
  0x11   :  { %1737 = shalt.err (!%p1734_p7)
}
  0x12   :  { %s1857_s28 = smov 64   ;;  %s1858_s29 = smov 4  }
  0x13   :  { %35 = dma.hbm_to_vmem [thread:$0]  %s3220_s1, 256, %s30_s19, [#allocation6], %s1857_s28, %s1857_s28, %s1858_s29  }
  0x14   :  { %s1859_s7 = smov [#allocation8]   ;;  %s1860_s9 = smov [#allocation2]  }
  0x15   :  { %s54_s8 = sshll.u32 %s1859_s7, 4  ;;  %s20_s10 = sshll.u32 %s1860_s9, 4  ;;  %s55_s8 = int_to_ptr.vmem [resolvable:$true] %s54_s8  ;;  %s21_s10 = int_to_ptr.vmem [resolvable:$true] %s20_s10 }
  0x16   :  { %s1738_s13 = scalar_lea.hbm %s3222_s3, 16 }
  0x17   :  { %p1739_p8 = scmp.ne.s32.totalorder %s3222_s3, %s1738_s13  ;;  %p1742_p9 = scmp.lt.u32.totalorder %s1738_s13, %s3222_s3 }
  0x19   :  { %p1744_p10 = pnand %p1742_p9, %p1739_p8 }
  0x1b   :  { %1747 = shalt.err (!%p1744_p10)
}
  0x1c   :  { %s1748_s1 = scalar_lea.vmem %s55_s8, 16  ;;  %s1752_s18 = scalar_lea.vmem %s55_s8, 32 }
  0x1d   :  { %p1749_p11 = scmp.ne.s32.totalorder %s55_s8, %s1748_s1  ;;  %p1753_p12 = scmp.lt.s32.totalorder %s55_s8, %s55_s8 }
  0x1e   :  { %p1754_p13 = scmp.lt.s32.totalorder %s1752_s18, %s1748_s1 }
  0x20   :  { %p1755_p0 = por %p1754_p13, %p1753_p12 }
  0x22   :  { %p1756_p1 = pnand %p1755_p0, %p1749_p11 }
  0x24   :  { %1759 = shalt.err (!%p1756_p1)
}
  0x25   :  { %57 = dma.hbm_to_vmem [thread:$0]  %s3222_s3, 16, %s55_s8, [#allocation9]  }
  0x26   :  { %s1760_s23 = scalar_lea.hbm %s3219_s0, 512 }
  0x27   :  { %p1761_p2 = scmp.ne.s32.totalorder %s3219_s0, %s1760_s23  ;;  %p1764_p3 = scmp.lt.u32.totalorder %s1760_s23, %s3219_s0 }
  0x29   :  { %p1766_p4 = pnand %p1764_p3, %p1761_p2 }
  0x2b   :  { %1769 = shalt.err (!%p1766_p4)
}
  0x2c   :  { %s1770_s28 = scalar_lea.vmem %s21_s10, 512  ;;  %p1775_p6 = scmp.lt.s32.totalorder %s21_s10, %s21_s10 }
  0x2d   :  { %p1771_p5 = scmp.ne.s32.totalorder %s21_s10, %s1770_s28  ;;  %p1776_p7 = scmp.lt.s32.totalorder %s1770_s28, %s1770_s28 }
  0x2f   :  { %p1777_p8 = por %p1776_p7, %p1775_p6 }
  0x31   :  { %p1778_p9 = pnand %p1777_p8, %p1771_p5 }
  0x33   :  { %1781 = shalt.err (!%p1778_p9)
}
  0x34   :  { %23 = dma.hbm_to_vmem [thread:$0]  %s3219_s0, 512, %s21_s10, [#allocation3]  }
  0x35   :  { %s1861_s30 = smov [#allocation7]   ;;  %s1782_s9 = scalar_lea.hbm %s3221_s2, 512 }
  0x36   :  { %s41_s6 = sshll.u32 %s1861_s30, 4  ;;  %p1783_p10 = scmp.ne.s32.totalorder %s3221_s2, %s1782_s9  ;;  %s42_s6 = int_to_ptr.vmem [resolvable:$true] %s41_s6 }
  0x37   :  { %p1786_p11 = scmp.lt.u32.totalorder %s1782_s9, %s3221_s2 }
  0x39   :  { %p1788_p12 = pnand %p1786_p11, %p1783_p10 }
  0x3b   :  { %1791 = shalt.err (!%p1788_p12)
}
  0x3c   :  { %s1792_s15 = scalar_lea.vmem %s42_s6, 512  ;;  %p1797_p0 = scmp.lt.s32.totalorder %s42_s6, %s42_s6 }
  0x3d   :  { %p1793_p13 = scmp.ne.s32.totalorder %s42_s6, %s1792_s15  ;;  %p1798_p1 = scmp.lt.s32.totalorder %s1792_s15, %s1792_s15 }
  0x3f   :  { %p1799_p2 = por %p1798_p1, %p1797_p0 }
  0x41   :  { %p1800_p3 = pnand %p1799_p2, %p1793_p13 }
  0x43   :  { %1803 = shalt.err (!%p1800_p3)
}
  0x44   :  { %s1862_s0 = smov 128   ;;  %s1863_s10 = smov 8  }
  0x45   :  { %47 = dma.hbm_to_vmem [thread:$0]  %s3221_s2, 512, %s42_s6, [#allocation6], %s1862_s0, %s1862_s0, %s1863_s10  }
  0x46   :  { %s1864_s1 = smov [#allocation10]   ;;  %s1804_s21 = scalar_lea.hbm %s3223_s4, 64 }
  0x47   :  { %s64_s18 = sshll.u32 %s1864_s1, 4  ;;  %p1805_p4 = scmp.ne.s32.totalorder %s3223_s4, %s1804_s21  ;;  %s65_s18 = int_to_ptr.vmem [resolvable:$true] %s64_s18 }
  0x48   :  { %p1808_p5 = scmp.lt.u32.totalorder %s1804_s21, %s3223_s4 }
  0x4a   :  { %p1810_p6 = pnand %p1808_p5, %p1805_p4 }
  0x4c   :  { %1813 = shalt.err (!%p1810_p6)
}
  0x4d   :  { %s1814_s26 = scalar_lea.vmem %s65_s18, 64  ;;  %p1819_p8 = scmp.lt.s32.totalorder %s65_s18, %s65_s18 }
  0x4e   :  { %p1815_p7 = scmp.ne.s32.totalorder %s65_s18, %s1814_s26  ;;  %p1820_p9 = scmp.lt.s32.totalorder %s1814_s26, %s1814_s26 }
  0x50   :  { %p1821_p10 = por %p1820_p9, %p1819_p8 }
  0x52   :  { %p1822_p11 = pnand %p1821_p10, %p1815_p7 }
  0x54   :  { %1825 = shalt.err (!%p1822_p11)
}
  0x55   :  { %67 = dma.hbm_to_vmem [thread:$0]  %s3223_s4, 64, %s65_s18, [#allocation9]  }
  0x56   :  { %1848 = dma.done.wait [#allocation3], 512  }
  0x57   :  { %1849 = vsyncadd [#allocation3], 4294966784 }
  0x58   :  { %1850 = dma.done.wait [#allocation6], 768  }
  0x59   :  { %1851 = vsyncadd [#allocation6], 4294966528 }
  0x5a   :  { %1852 = dma.done.wait [#allocation9], 80  }
  0x5b   :  { %1853 = vsyncadd [#allocation9], 4294967216  ;;  %v3228_v0 = vmov 0   ;;  %v3225_v1 = vmov 1   ;;  %v85_v2 = vld [vmem:[#allocation2 + $0x8] sm:$0xff]  ;;  %vm113_vm0 = vcmask 1043456  }
  0x5c   :  { %158 = vmatprep.mubr.bf16.mxu0 %v3228_v0  ;;  %211 = vmatprep.mubr.bf16.mxu1 %v3228_v0  ;;  %v87_v3 = vld [vmem:[#allocation2 + $0x18] sm:$0xff]  ;;  %v84_v4 = vld [vmem:[#allocation2] sm:$0xff]  ;;  %v93_v5 = vpack.c.bf16 %v85_v2, %v85_v2  ;;  %v86_v8 = vld [vmem:[#allocation2 + $0x10] sm:$0xff]  ;;  %vm106_vm1 = vcmask 64512   ;;  %v3230_v17 = vmov 2   ;;  %v1868_v19 = vmov 6  }
  0x5d   :  { %1594 = vset.pattern.permute.xlu1 %v3225_v1  ;;  %1593 = vset.pattern.permute.xlu0 %v3228_v0  ;;  %v95_v6 = vpack.c.bf16 %v87_v3, %v87_v3  ;;  %v92_v7 = vpack.c.bf16 %v84_v4, %v84_v4  ;;  %v94_v9 = vpack.c.bf16 %v86_v8, %v86_v8  ;;  %v1622_v11 = vld [vmem:[#allocation5] sm:$0xff]   ;;  %v1973_v12 = vld [vmem:[#allocation7] sm:$0xff]  ;;  %v1977_v14 = vld [vmem:[#allocation7 + $0x18] sm:$0xff]  ;;  %v1869_v20 = vmov 7   ;;  %s1874_s4 = smov 1   ;;  %s1875_s28 = smov 127  }
  0x5e   :  { %1557 = vmatprep.subr.msk.bf16.mxu0 %vm113_vm0, %v93_v5  ;;  %608 = vperm.xlu1 %1594, %v1973_v12   ;;  %v1984_v15 = vld [vmem:[#allocation7 + $0x8] sm:$0xff]  ;;  %v1623_v16 = vld [vmem:[#allocation5 + $0x8] sm:$0xff]   ;;  %v1993_v18 = vld [vmem:[#allocation7 + $0x10] sm:$0xff]  ;;  %v1870_v21 = vmov 8   ;;  %v1871_v22 = vmov 3   ;;  %v1872_v23 = vmov 5  }
  0x5f   :  { %1560 = vmatprep.subr.msk.bf16.mxu1 %vm113_vm0, %v95_v6  ;;  %v115_v10 = vsel %vm113_vm0, %v92_v7, 0  ;;  %v121_v13 = vsel %vm113_vm0, %v94_v9, 0  ;;  %573 = vperm.xlu0 %1593, %v1973_v12   ;;  %v1873_v24 = vmov 4   ;;  %s1876_s3 = smov 16   ;;  %s1877_s29 = smov 112  }
  0x60   :  { %127 = vmatpush1.bf16.msra.mxu0 %v115_v10  ;;  %180 = vmatpush1.bf16.msra.mxu1 %v121_v13  ;;  %s1878_s30 = smov [#allocation11]  }
  0x61   :  { %s1544_s6 = sshll.u32 %s1878_s30, 4  ;;  %s1545_s6 = int_to_ptr.vmem [resolvable:$true] %s1544_s6 }
  0x62   :  { %620 = vperm.xlu1 %1594, %v1977_v14   ;;  %s1826_s7 = scalar_lea.vmem %s1545_s6, 512  ;;  %p1831_p13 = scmp.lt.s32.totalorder %s1545_s6, %s1545_s6 }
  0x63   :  { %1558 = vmatmul.mubr.msk.bf16.vlgmr.msra.gmra.mrb[0].mxu0 %vm106_vm1, %v1622_v11  ;;  %1561 = vmatmul.mubr.msk.bf16.vlgmr.msra.gmra.mrb[0].mxu1 %vm106_vm1, %v1622_v11  ;;  %p1827_p12 = scmp.ne.s32.totalorder %s1545_s6, %s1826_s7  ;;  %p1832_p0 = scmp.lt.s32.totalorder %s1826_s7, %s1826_s7 }
  0x64   :  { %168 = vmatprep.mubr.bf16.mxu0 %v3228_v0  ;;  %221 = vmatprep.mubr.bf16.mxu1 %v3228_v0 }
  0x65   :  { %588 = vperm.xlu0 %1593, %v1977_v14   ;;  %p1833_p1 = por %p1832_p0, %p1831_p13 }
  0x66   :  { %612 = vperm.xlu1 %1594, %v1984_v15  }
  0x67   :  { %p1834_p2 = pnand %p1833_p1, %p1827_p12 }
  0x69   :  { %578 = vperm.xlu0 %1593, %v1984_v15  }
  0x6a   :  { %1595 = vset.pattern.permute.xlu1 %v3230_v17 }
  0x6b   :  { %1559 = vmatmul.mubr.msk.bf16.gmra.mrb[4].mxu0 %vm106_vm1, %v1623_v16  ;;  %1562 = vmatmul.mubr.msk.bf16.gmra.mrb[4].mxu1 %vm106_vm1, %v1623_v16 }
  0x6c   :  { %1460 = vmatprep.mubr.bf16.mxu0 %v3228_v0  ;;  %1501 = vmatprep.mubr.bf16.mxu1 %v3228_v0 }
  0x6d   :  { %668 = vperm.xlu1 %1595, %v1977_v14   ;;  %583 = vperm.xlu0 %1593, %v1993_v18  }
  0x71   :  { %1596 = vset.pattern.permute.xlu1 %v1868_v19  ;;  %1598 = vset.pattern.permute.xlu0 %v1868_v19 }
  0x72   :  { %832 = vperm.xlu1 %1596, %v1973_v12   ;;  %844 = vperm.xlu0 %1598, %v1977_v14  }
  0x76   :  { %1597 = vset.pattern.permute.xlu1 %v1869_v20  ;;  %836 = vperm.xlu0 %1598, %v1984_v15  }
  0x77   :  { %864 = vperm.xlu1 %1597, %v1973_v12  }
  0x7a   :  { %1601 = vset.pattern.permute.xlu0 %v3230_v17 }
  0x7b   :  { %876 = vperm.xlu1 %1597, %v1977_v14   ;;  %656 = vperm.xlu0 %1601, %v1973_v12  }
  0x7f   :  { %1599 = vset.pattern.permute.xlu1 %v3225_v1  ;;  %664 = vperm.xlu0 %1601, %v1993_v18  }
  0x80   :  { %616 = vperm.xlu1 %1599, %v1993_v18  }
  0x83   :  { %1604 = vset.pattern.permute.xlu0 %v1870_v21 }
  0x84   :  { %1600 = vset.pattern.permute.xlu1 %v3230_v17  ;;  %924 = vperm.xlu0 %1604, %v1977_v14  }
  0x85   :  { %660 = vperm.xlu1 %1600, %v1984_v15  }
  0x88   :  { %916 = vperm.xlu0 %1604, %v1984_v15  }
  0x89   :  { %1602 = vset.pattern.permute.xlu1 %v1869_v20 }
  0x8a   :  { %868 = vperm.xlu1 %1602, %v1984_v15  }
  0x8c   :  { %920 = vperm.xlu0 %1604, %v1993_v18  }
  0x8e   :  { %1603 = vset.pattern.permute.xlu1 %v1870_v21 }
  0x8f   :  { %912 = vperm.xlu1 %1603, %v1973_v12  }
  0x90   :  { %1608 = vset.pattern.permute.xlu0 %v1871_v22 }
  0x91   :  { %716 = vperm.xlu0 %1608, %v1977_v14  }
  0x93   :  { %1605 = vset.pattern.permute.xlu1 %v1868_v19 }
  0x94   :  { %840 = vperm.xlu1 %1605, %v1993_v18  }
  0x95   :  { %708 = vperm.xlu0 %1608, %v1984_v15  }
  0x98   :  { %1606 = vset.pattern.permute.xlu1 %v1869_v20 }
  0x99   :  { %872 = vperm.xlu1 %1606, %v1993_v18   ;;  %1610 = vset.pattern.permute.xlu0 %v1872_v23 }
  0x9a   :  { %784 = vperm.xlu0 %1610, %v1973_v12  }
  0x9d   :  { %1607 = vset.pattern.permute.xlu1 %v1871_v22 }
  0x9e   :  { %704 = vperm.xlu1 %1607, %v1973_v12   ;;  %1613 = vset.pattern.permute.xlu0 %v1873_v24 }
  0xa2   :  { %1609 = vset.pattern.permute.xlu1 %v1873_v24 }
  0xa3   :  { %736 = vperm.xlu1 %1609, %v1973_v12  }
  0xa7   :  { %748 = vperm.xlu1 %1609, %v1977_v14  }
  0xab   :  { %740 = vperm.xlu1 %1609, %v1984_v15  }
  0xaf   :  { %1611 = vset.pattern.permute.xlu1 %v1872_v23 }
  0xb0   :  { %796 = vperm.xlu1 %1611, %v1977_v14  }
  0xb4   :  { %1612 = vset.pattern.permute.xlu1 %v1871_v22 }
  0xb5   :  { %712 = vperm.xlu1 %1612, %v1993_v18  }
  0xb9   :  { %1614 = vset.pattern.permute.xlu1 %v1872_v23 }
  0xdd   :  { %v2057_v61 = vpop.permute.xlu1 %608 }
  0xe1   :  { %v2066_v8 = vpop.permute.xlu1 %620 }
  0xe2   :  { %3282 = vst [vmem:[#allocation17_spill] sm:$0xff] %v2066_v8 }
  0xe5   :  { %v2081_v21 = vpop.permute.xlu1 %612 }
 0x136   :  { %v160_v25 = vpop.f32.mrb[0].mxu0  ;;  %v213_v27 = vpop.f32.mrb[0].mxu1 }
 0x137   :  { %v248_v26 = vmul.f32 0.70710677, %v160_v25  ;;  %v162_v28 = vpop.f32.mrb[1].mxu0  ;;  %v250_v29 = vmul.f32 0.70710677, %v213_v27  ;;  %v2026_v30 = vpop.f32.mrb[1].mxu1 }
 0x138   :  { %v164_v31 = vpop.f32.mrb[2].mxu0  ;;  %v217_v32 = vpop.f32.mrb[2].mxu1  ;;  %v249_v37 = vmul.f32 0.70710677, %v162_v28  ;;  %v251_v45 = vmul.f32 0.70710677, %v2026_v30 }
 0x139   :  { %1624 = verf.f32 %v248_v26  ;;  %v166_v33 = vpop.f32.mrb[3].mxu0  ;;  %v252_v34 = vmul.f32 0.70710677, %v164_v31  ;;  %v2028_v35 = vpop.f32.mrb[3].mxu1  ;;  %v254_v36 = vmul.f32 0.70710677, %v217_v32 }
 0x13a   :  { %1626 = verf.f32 %v250_v29  ;;  %v253_v43 = vmul.f32 0.70710677, %v166_v33  ;;  %v232_v50 = vmul.f32 0.5, %v160_v25  ;;  %v234_v52 = vmul.f32 0.5, %v213_v27 }
 0x13b   :  { %1628 = verf.f32 %v252_v34  ;;  %v255_v54 = vmul.f32 0.70710677, %v2028_v35  ;;  %v236_v58 = vmul.f32 0.5, %v164_v31  ;;  %v238_v9 = vmul.f32 0.5, %v217_v32 }
 0x13c   :  { %1630 = verf.f32 %v254_v36  ;;  %v233_v10 = vmul.f32 0.5, %v162_v28  ;;  %v237_v19 = vmul.f32 0.5, %v166_v33  ;;  %v235_v20 = vmul.f32 0.5, %v2026_v30  ;;  %v2097_v33 = vpop.permute.xlu1 %668 }
 0x13d   :  { %1632 = verf.f32 %v249_v37  ;;  %v239_v26 = vmul.f32 0.5, %v2028_v35  ;;  %3283 = vst [vmem:[#allocation18_spill] sm:$0xff] %v2097_v33 }
 0x13e   :  { %v2030_v38 = vpop.f32.mrb[4].mxu0  ;;  %v2034_v40 = vpop.f32.mrb[4].mxu1  ;;  %1634 = verf.f32 %v253_v43 }
 0x13f   :  { %v2032_v39 = vpop.f32.mrb[5].mxu0  ;;  %v2038_v42 = vpop.f32.mrb[5].mxu1  ;;  %1636 = verf.f32 %v251_v45  ;;  %v256_v60 = vmul.f32 0.70710677, %v2030_v38  ;;  %v258_v3 = vmul.f32 0.70710677, %v2034_v40 }
 0x140   :  { %v2036_v41 = vpop.f32.mrb[6].mxu0  ;;  %v2043_v46 = vpop.f32.mrb[6].mxu1  ;;  %1638 = verf.f32 %v255_v54  ;;  %v240_v29 = vmul.f32 0.5, %v2030_v38  ;;  %v257_v31 = vmul.f32 0.70710677, %v2032_v39  ;;  %v242_v34 = vmul.f32 0.5, %v2034_v40 }
 0x141   :  { %v2040_v44 = vpop.f32.mrb[7].mxu0  ;;  %v2045_v48 = vpop.f32.mrb[7].mxu1  ;;  %1640 = verf.f32 %v256_v60  ;;  %v260_v27 = vmul.f32 0.70710677, %v2036_v41  ;;  %v262_v35 = vmul.f32 0.70710677, %v2043_v46 }
 0x142   :  { %1642 = verf.f32 %v258_v3  ;;  %v259_v38 = vmul.f32 0.70710677, %v2038_v42  ;;  %v2112_v43 = vpop.permute.xlu1 %832  ;;  %v241_v54 = vmul.f32 0.5, %v2032_v39  ;;  %v263_v60 = vmul.f32 0.70710677, %v2045_v48 }
 0x143   :  { %v1625_v47 = vpop.eup %1624  ;;  %1644 = verf.f32 %v260_v27 }
 0x144   :  { %v1627_v49 = vpop.eup %1626  ;;  %v280_v51 = vadd.f32 1.0, %v1625_v47  ;;  %1646 = verf.f32 %v257_v31 }
 0x145   :  { %v282_v53 = vadd.f32 1.0, %v1627_v49  ;;  %v1629_v56 = vpop.eup %1628  ;;  %1648 = verf.f32 %v262_v35 }
 0x146   :  { %v2048_v55 = vmul.f32 %v280_v51, %v232_v50  ;;  %v284_v59 = vadd.f32 1.0, %v1629_v56  ;;  %v1631_v63 = vpop.eup %1630  ;;  %1650 = verf.f32 %v259_v38  ;;  %v2120_v49 = vpop.permute.xlu1 %864  ;;  %v261_v50 = vmul.f32 0.70710677, %v2040_v44 }
 0x147   :  { %v2050_v57 = vmul.f32 %v282_v53, %v234_v52  ;;  %v1633_v2 = vpop.eup %1632  ;;  %v286_v4 = vadd.f32 1.0, %v1631_v63  ;;  %v244_v51 = vmul.f32 0.5, %v2036_v41 }
 0x148   :  { %421 = vrot.lane.b32.xlu1 %v2048_v55, %s1874_s4  ;;  %v2059_v62 = vmul.f32 %v284_v59, %v236_v58  ;;  %v1635_v5 = vpop.eup %1634  ;;  %v281_v6 = vadd.f32 1.0, %v1633_v2  ;;  %v2129_v58 = vpop.permute.xlu0 %573  ;;  %1652 = verf.f32 %v261_v50  ;;  %v246_v2 = vmul.f32 0.5, %v2043_v46 }
 0x149   :  { %437 = vrot.lane.b32.xlu0 %v2050_v57, %s1874_s4  ;;  %v1637_v7 = vpop.eup %1636  ;;  %v2072_v11 = vmul.f32 %v286_v4, %v238_v9  ;;  %v285_v12 = vadd.f32 1.0, %v1635_v5  ;;  %v243_v4 = vmul.f32 0.5, %v2038_v42  ;;  %1654 = verf.f32 %v263_v60 }
 0x14a   :  { %3281 = vst [vmem:[#allocation16_spill] sm:$0xff] %v2059_v62  ;;  %v1639_v13 = vpop.eup %1638  ;;  %v2074_v14 = vmul.f32 %v281_v6, %v233_v10  ;;  %v283_v16 = vadd.f32 1.0, %v1637_v7  ;;  %v2136_v63 = vpop.permute.xlu1 %876 }
 0x14b   :  { %v2083_v22 = vmul.f32 %v285_v12, %v237_v19  ;;  %v287_v23 = vadd.f32 1.0, %v1639_v13  ;;  %v1641_v24 = vpop.eup %1640  ;;  %3286 = vst [vmem:[#allocation21_spill] sm:$0xff] %v2136_v63  ;;  %v245_v13 = vmul.f32 0.5, %v2040_v44 }
 0x14c   :  { %423 = vrot.lane.b32.xlu1 %v2059_v62, %s1874_s4  ;;  %v2085_v25 = vmul.f32 %v283_v16, %v235_v20  ;;  %v288_v30 = vadd.f32 1.0, %v1641_v24  ;;  %v1643_v32 = vpop.eup %1642  ;;  %v2148_v6 = vpop.permute.xlu0 %588  ;;  %v247_v24 = vmul.f32 0.5, %v2045_v48 }
 0x14d   :  { %498 = vrot.lane.b32.xlu0 %v2048_v55, %s1875_s28  ;;  %v2093_v28 = vmul.f32 %v287_v23, %v239_v26  ;;  %v290_v37 = vadd.f32 1.0, %v1643_v32  ;;  %v1645_v45 = vpop.eup %1644  ;;  %3287 = vst [vmem:[#allocation22_spill] sm:$0xff] %v2148_v6 }
 0x14e   :  { %v2105_v36 = vmul.f32 %v288_v30, %v240_v29  ;;  %v1647_v47 = vpop.eup %1646  ;;  %v292_v52 = vadd.f32 1.0, %v1645_v45  ;;  %v2154_v46 = vpop.permute.xlu1 %616 }
 0x14f   :  { %v2114_v40 = vmul.f32 %v290_v37, %v242_v34  ;;  %v1649_v53 = vpop.eup %1648  ;;  %v289_v56 = vadd.f32 1.0, %v1647_v47 }
 0x150   :  { %500 = vrot.lane.b32.xlu1 %v2059_v62, %s1875_s28  ;;  %3284 = vst [vmem:[#allocation19_spill] sm:$0xff] %v2105_v36  ;;  %v1651_v59 = vpop.eup %1650  ;;  %v2138_v41 = vmul.f32 %v292_v52, %v244_v51  ;;  %v294_v39 = vadd.f32 1.0, %v1649_v53  ;;  %v2160_v10 = vpop.permute.xlu0 %578 }
 0x151   :  { %514 = vrot.lane.b32.xlu0 %v2050_v57, %s1875_s28  ;;  %3285 = vst [vmem:[#allocation20_spill] sm:$0xff] %v2114_v40  ;;  %v2141_v3 = vmul.f32 %v289_v56, %v241_v54  ;;  %v291_v5 = vadd.f32 1.0, %v1651_v59  ;;  %v3227_v59 = vlaneseq }
 0x152   :  { %v2150_v7 = vmul.f32 %v294_v39, %v246_v2  ;;  %v1653_v42 = vpop.eup %1652  ;;  %v2166_v12 = vpop.permute.xlu1 %660 }
 0x153   :  { %v2152_v9 = vmul.f32 %v291_v5, %v243_v4  ;;  %v293_v16 = vadd.f32 1.0, %v1653_v42  ;;  %v1655_v19 = vpop.eup %1654  ;;  %v2234_v2 = vand.u32 127, %v3227_v59 }
 0x154   :  { %516 = vrot.lane.b32.xlu1 %v2072_v11, %s1875_s28  ;;  %3288 = vst [vmem:[#allocation23_spill] sm:$0xff] %v2150_v7  ;;  %v2173_v20 = vpop.permute.xlu0 %583  ;;  %v295_v26 = vadd.f32 1.0, %v1655_v19 }
 0x155   :  { %429 = vrot.lane.b32.xlu0 %v2074_v14, %s1874_s4  ;;  %3289 = vst [vmem:[#allocation24_spill] sm:$0xff] %v2152_v9  ;;  %3290 = vst [vmem:[#allocation25_spill] sm:$0xff] %v2173_v20  ;;  %v2175_v23 = vmul.f32 %v293_v16, %v245_v13  ;;  %v2239_v5 = vadd.s32 256, %v2234_v2  ;;  %vm453_vm2 = vcmp.lt.s32.totalorder %v2234_v2, 1  ;;  %v369_v59 = vand.u32 15, %v2234_v2 }
 0x156   :  { %v2178_v27 = vpop.permute.xlu1 %868  ;;  %v2185_v29 = vmul.f32 %v295_v26, %v247_v24  ;;  %3302 = vst [vmem:[#allocation37_spill] sm:$0xff] %v2234_v2  ;;  %v2246_v24 = vadd.s32 128, %v2234_v2  ;;  %v2272_v6 = vadd.s32 384, %v2234_v2  ;;  %vm530_vm5 = vcmp.lt.s32.totalorder %v2234_v2, 127 }
 0x157   :  { %3303 = vst [vmem:[#allocation38_spill] sm:$0xff] %v2239_v5  ;;  %v383_v16 = vand.u32 15, %v2239_v5  ;;  %vm2267_vm4 = vcmp.ge.s32.totalorder %v369_v59, 1  ;;  %vm2297_vm7 = vcmp.lt.s32.totalorder %v369_v59, 15  ;;  %v3321_v20 = vmov 0 }
 0x158   :  { %431 = vrot.lane.b32.xlu1 %v2083_v22, %s1874_s4  ;;  %v2183_v44 = vpop.permute.xlu0 %844  ;;  %3292 = vst [vmem:[#allocation27_spill] sm:$0xff] %v2185_v29  ;;  %3304 = vst [vmem:[#allocation39_spill] sm:$0xff] %v2246_v24  ;;  %v376_v63 = vand.u32 15, %v2246_v24 }
 0x159   :  { %445 = vrot.lane.b32.xlu0 %v2085_v25, %s1874_s4  ;;  %3291 = vst [vmem:[#allocation26_spill] sm:$0xff] %v2183_v44  ;;  %vm2248_vm3 = vcmp.ge.s32.totalorder %v383_v16, 1  ;;  %3310 = vst [vmem:[#allocation41_spill] sm:$0xff] %v2272_v6  ;;  %vm2310_vm9 = vcmp.lt.s32.totalorder %v383_v16, 15 }
 0x15a   :  { %v2190_v30 = vpop.permute.xlu1 %912  ;;  %vm2291_vm6 = vcmp.ge.s32.totalorder %v376_v63, 1  ;;  %vm2301_vm8 = vcmp.lt.s32.totalorder %v376_v63, 15  ;;  %v3322_v20 = vsel %vm2310_vm9, 4294967295, %v3321_v20 }
 0x15b   :  { %3323 = vst [vmem:[#allocation46_spill] sm:$0xff] %v3322_v20 }
 0x15c   :  { %447 = vrot.lane.b32.xlu1 %v2093_v28, %s1874_s4  ;;  %v2192_v48 = vpop.permute.xlu0 %836 }
 0x15d   :  { %506 = vrot.lane.b32.xlu0 %v2074_v14, %s1875_s28 }
 0x15e   :  { %v2196_v31 = vpop.permute.xlu1 %840 }
 0x15f   :  { %3293 = vst [vmem:[#allocation28_spill] sm:$0xff] %v2196_v31 }
 0x160   :  { %425 = vrot.lane.b32.xlu1 %v2105_v36, %s1874_s4  ;;  %v2200_v32 = vpop.permute.xlu0 %656 }
 0x161   :  { %522 = vrot.lane.b32.xlu0 %v2085_v25, %s1875_s28 }
 0x162   :  { %v2203_v34 = vpop.permute.xlu1 %872 }
 0x163   :  { %3294 = vst [vmem:[#allocation29_spill] sm:$0xff] %v2203_v34 }
 0x164   :  { %441 = vrot.lane.b32.xlu1 %v2114_v40, %s1874_s4  ;;  %v2205_v35 = vpop.permute.xlu0 %664 }
 0x165   :  { %439 = vrot.lane.b32.xlu0 %v2072_v11, %s1874_s4  ;;  %3295 = vst [vmem:[#allocation30_spill] sm:$0xff] %v2205_v35 }
 0x166   :  { %v2208_v37 = vpop.permute.xlu1 %704 }
 0x168   :  { %502 = vrot.lane.b32.xlu1 %v2105_v36, %s1875_s28  ;;  %v2211_v38 = vpop.permute.xlu0 %924 }
 0x169   :  { %508 = vrot.lane.b32.xlu0 %v2083_v22, %s1875_s28  ;;  %3296 = vst [vmem:[#allocation31_spill] sm:$0xff] %v2211_v38 }
 0x16a   :  { %v2213_v45 = vpop.permute.xlu1 %736 }
 0x16b   :  { %v753_v38 = vmul.f32 %v2213_v45, %v2050_v57  ;;  %v2282_v36 = vmul.f32 %v2213_v45, %v2074_v14 }
 0x16c   :  { %518 = vrot.lane.b32.xlu1 %v2114_v40, %s1875_s28  ;;  %v2215_v47 = vpop.permute.xlu0 %916 }
 0x16d   :  { %524 = vrot.lane.b32.xlu0 %v2093_v28, %s1875_s28  ;;  %3312 = vst [vmem:[#allocation43_spill] sm:$0xff] %v2282_v36 }
 0x16e   :  { %v2217_v50 = vpop.permute.xlu1 %748 }
 0x16f   :  { %3297 = vst [vmem:[#allocation32_spill] sm:$0xff] %v2217_v50 }
 0x170   :  { %427 = vrot.lane.b32.xlu1 %v2138_v41, %s1874_s4  ;;  %v2219_v51 = vpop.permute.xlu0 %920 }
 0x171   :  { %433 = vrot.lane.b32.xlu0 %v2141_v3, %s1874_s4  ;;  %3298 = vst [vmem:[#allocation33_spill] sm:$0xff] %v2219_v51  ;;  %v3313_v51 = vmov 0 }
 0x172   :  { %v2223_v52 = vpop.permute.xlu1 %740  ;;  %v3314_v51 = vsel %vm2291_vm6, 4294967295, %v3313_v51 }
 0x173   :  { %v755_v8 = vmul.f32 %v2223_v52, %v2059_v62  ;;  %3315 = vst [vmem:[#allocation44_spill] sm:$0xff] %v3314_v51 }
 0x174   :  { %443 = vrot.lane.b32.xlu1 %v2150_v7, %s1874_s4  ;;  %v3347_v51 = vld [vmem:[#allocation43_spill] sm:$0xff] }
 0x175   :  { %449 = vrot.lane.b32.xlu0 %v2152_v9, %s1874_s4 }
 0x176   :  { %v2225_v53 = vpop.permute.xlu1 %796 }
 0x177   :  { %3300 = vst [vmem:[#allocation35_spill] sm:$0xff] %v2225_v53  ;;  %v3307_v53 = vmov 0 }
 0x178   :  { %504 = vrot.lane.b32.xlu1 %v2138_v41, %s1875_s28  ;;  %v3308_v53 = vsel %vm2267_vm4, 4294967295, %v3307_v53 }
 0x179   :  { %510 = vrot.lane.b32.xlu0 %v2141_v3, %s1875_s28  ;;  %3309 = vst [vmem:[#allocation40_spill] sm:$0xff] %v3308_v53 }
 0x17a   :  { %v2229_v54 = vpop.permute.xlu1 %712 }
 0x17c   :  { %520 = vrot.lane.b32.xlu1 %v2150_v7, %s1875_s28 }
 0x17d   :  { %526 = vrot.lane.b32.xlu0 %v2152_v9, %s1875_s28 }
 0x180   :  { %435 = vrot.lane.b32.xlu1 %v2175_v23, %s1874_s4 }
 0x181   :  { %744 = vperm.xlu0 %1613, %v1993_v18  }
 0x184   :  { %451 = vrot.lane.b32.xlu1 %v2185_v29, %s1874_s4 }
 0x185   :  { %1616 = vset.pattern.permute.xlu0 %v3225_v1 }
 0x188   :  { %512 = vrot.lane.b32.xlu1 %v2175_v23, %s1875_s28 }
 0x18c   :  { %528 = vrot.lane.b32.xlu1 %v2185_v29, %s1875_s28 }
 0x190   :  { %788 = vperm.xlu1 %1614, %v1984_v15   ;;  %v2221_v15 = vpop.permute.xlu0 %716 }
 0x191   :  { %3299 = vst [vmem:[#allocation34_spill] sm:$0xff] %v2221_v15 }
 0x194   :  { %792 = vperm.xlu1 %1614, %v1993_v18   ;;  %v2227_v18 = vpop.permute.xlu0 %708 }
 0x195   :  { %3301 = vst [vmem:[#allocation36_spill] sm:$0xff] %v2227_v18 }
 0x198   :  { %1615 = vset.pattern.permute.xlu1 %v3228_v0  ;;  %v2231_v56 = vpop.permute.xlu0 %784 }
 0x1ba   :  { %v422_v60 = vpop.permute.xlu1 %421 }
 0x1bb   :  { %v2236_v39 = vpop.permute.xlu0 %437 }
 0x1be   :  { %v424_v4 = vpop.permute.xlu1 %423 }
 0x1bf   :  { %v499_v42 = vpop.permute.xlu0 %498 }
 0x1c2   :  { %v2241_v13 = vpop.permute.xlu1 %500 }
 0x1c3   :  { %v515_v19 = vpop.permute.xlu0 %514 }
 0x1c6   :  { %v2252_v1 = vpop.permute.xlu1 %516 }
 0x1c7   :  { %v430_v0 = vpop.permute.xlu0 %429 }
 0x1c8   :  { %v458_v17 = vsel %vm453_vm2, %v430_v0, %v2236_v39 }
 0x1c9   :  { %v2260_v5 = vsel %vm2248_vm3, %v458_v17, 0.0  ;;  %v751_v17 = vmul.f32 %v2213_v45, %v2048_v55 }
 0x1ca   :  { %v721_v44 = vmul.f32 %v2208_v37, %v2260_v5  ;;  %v432_v33 = vpop.permute.xlu1 %431 }
 0x1cb   :  { %v446_v29 = vpop.permute.xlu0 %445  ;;  %v463_v53 = vsel %vm453_vm2, %v424_v4, %v432_v33 }
 0x1cc   :  { %v2276_v40 = vadd.f32 %v753_v38, %v721_v44  ;;  %v466_v24 = vsel %vm453_vm2, %v446_v29, %v422_v60  ;;  %v3316_v38 = vmov 0 }
 0x1cd   :  { %v2288_v15 = vsel %vm2267_vm4, %v466_v24, 0.0  ;;  %v3317_v38 = vsel %vm2297_vm7, 4294967295, %v3316_v38  ;;  %v462_v24 = vsel %vm453_vm2, %v422_v60, %v430_v0 }
 0x1ce   :  { %3311 = vst [vmem:[#allocation42_spill] sm:$0xff] %v2276_v40  ;;  %v719_v44 = vmul.f32 %v2208_v37, %v2288_v15  ;;  %3318 = vst [vmem:[#allocation45_spill] sm:$0xff] %v3317_v38  ;;  %v448_v34 = vpop.permute.xlu1 %447  ;;  %v390_v40 = vand.u32 15, %v2272_v6  ;;  %v591_v60 = vmul.f32 %v2129_v58, %v2288_v15  ;;  %v623_v38 = vmul.f32 %v2057_v61, %v2048_v55 }
 0x1cf   :  { %v507_v35 = vpop.permute.xlu0 %506  ;;  %v467_v9 = vsel %vm453_vm2, %v448_v34, %v424_v4 }
 0x1d0   :  { %v2314_v59 = vadd.f32 %v751_v17, %v719_v44  ;;  %v535_v63 = vsel %vm530_vm5, %v507_v35, %v515_v19  ;;  %v539_v36 = vsel %vm530_vm5, %v499_v42, %v507_v35  ;;  %v2322_v0 = vsel %vm2267_vm4, %v467_v9, 0.0 }
 0x1d1   :  { %3325 = vst [vmem:[#allocation48_spill] sm:$0xff] %v2322_v0  ;;  %v2328_v16 = vsel %vm2297_vm7, %v539_v36, 0.0  ;;  %v2332_v17 = vsel %vm2301_vm8, %v535_v63, 0.0  ;;  %v723_v44 = vmul.f32 %v2227_v18, %v2322_v0  ;;  %v2338_v35 = vsel %vm2291_vm6, %v462_v24, 0.0 }
 0x1d2   :  { %3324 = vst [vmem:[#allocation47_spill] sm:$0xff] %v2314_v59  ;;  %v2342_v9 = vmul.f32 %v2231_v56, %v2328_v16  ;;  %v2346_v6 = vmul.f32 %v2231_v56, %v2332_v17  ;;  %vm2348_vm10 = vcmp.lt.s32.totalorder %v390_v40, 15  ;;  %v2352_v63 = vpop.permute.xlu1 %425  ;;  %v2356_v59 = vmul.f32 %v2213_v45, %v2085_v25 }
 0x1d3   :  { %v671_v24 = vmul.f32 %v2200_v32, %v2328_v16  ;;  %v2360_v0 = vadd.f32 %v755_v8, %v723_v44  ;;  %v592_v8 = vmul.f32 %v2129_v58, %v2338_v35  ;;  %vm2382_vm11 = vcmp.ge.s32.totalorder %v390_v40, 1 }
 0x1d4   :  { %3326 = vst [vmem:[#allocation49_spill] sm:$0xff] %v2342_v9  ;;  %3327 = vst [vmem:[#allocation50_spill] sm:$0xff] %v2346_v6  ;;  %v523_v9 = vpop.permute.xlu0 %522  ;;  %v757_v6 = vmul.f32 %v2223_v52, %v2072_v11  ;;  %v454_v40 = vsel %vm453_vm2, %v2236_v39, %v446_v29  ;;  %v2421_v39 = vmul.f32 %v2217_v50, %v2138_v41 }
 0x1d5   :  { %3330 = vst [vmem:[#allocation51_spill] sm:$0xff] %v2356_v59  ;;  %3331 = vst [vmem:[#allocation52_spill] sm:$0xff] %v2360_v0  ;;  %v531_v62 = vsel %vm530_vm5, %v515_v19, %v523_v9  ;;  %v543_v45 = vsel %vm530_vm5, %v523_v9, %v499_v42  ;;  %v639_v59 = vadd.f32 %v623_v38, %v591_v60  ;;  %v2403_v38 = vsel %vm2291_vm6, %v463_v53, 0.0 }
 0x1d6   :  { %v2376_v44 = vsel %vm2310_vm9, %v531_v62, 0.0  ;;  %v2380_v0 = vsel %vm2348_vm10, %v543_v45, 0.0  ;;  %v2394_v9 = vpop.permute.xlu1 %441  ;;  %v624_v62 = vmul.f32 %v2057_v61, %v2074_v14  ;;  %3335 = vst [vmem:[#allocation54_spill] sm:$0xff] %v2403_v38  ;;  %v672_v60 = vmul.f32 %v2200_v32, %v2332_v17  ;;  %3338 = vst [vmem:[#allocation57_spill] sm:$0xff] %v2421_v39 }
 0x1d7   :  { %v2388_v19 = vmul.f32 %v2231_v56, %v2376_v44  ;;  %v2392_v42 = vmul.f32 %v2231_v56, %v2380_v0  ;;  %v687_v45 = vadd.f32 %v671_v24, %v639_v59  ;;  %v2409_v56 = vmul.f32 %v2223_v52, %v2083_v22 }
 0x1d8   :  { %v440_v20 = vpop.permute.xlu0 %439  ;;  %v593_v59 = vmul.f32 %v2129_v58, %v2260_v5  ;;  %v640_v24 = vadd.f32 %v624_v62, %v592_v8 }
 0x1d9   :  { %3334 = vst [vmem:[#allocation53_spill] sm:$0xff] %v2392_v42  ;;  %3336 = vst [vmem:[#allocation55_spill] sm:$0xff] %v2409_v56  ;;  %v2413_v42 = vmul.f32 %v2223_v52, %v2093_v28  ;;  %v455_v29 = vsel %vm453_vm2, %v440_v20, %v448_v34  ;;  %v459_v53 = vsel %vm453_vm2, %v432_v33, %v440_v20  ;;  %963 = vrot.lane.b32.xlu0 %v687_v45, %s1876_s3 }
 0x1da   :  { %v2428_v52 = vsel %vm2248_vm3, %v459_v53, 0.0  ;;  %v2432_v34 = vmul.f32 %v2217_v50, %v2175_v23  ;;  %v2436_v33 = vsel %vm2382_vm11, %v454_v40, 0.0  ;;  %v596_v20 = vmul.f32 %v2160_v10, %v2403_v38  ;;  %v2442_v45 = vpop.permute.xlu1 %502 }
 0x1db   :  { %3337 = vst [vmem:[#allocation56_spill] sm:$0xff] %v2413_v42  ;;  %v725_v42 = vmul.f32 %v2227_v18, %v2428_v52  ;;  %v673_v53 = vmul.f32 %v2200_v32, %v2376_v44  ;;  %v2448_v8 = vsel %vm2382_vm11, %v455_v29, 0.0  ;;  %v688_v62 = vadd.f32 %v672_v60, %v640_v24 }
 0x1dc   :  { %3339 = vst [vmem:[#allocation58_spill] sm:$0xff] %v2432_v34  ;;  %v2450_v34 = vpop.permute.xlu0 %508  ;;  %v625_v40 = vmul.f32 %v2057_v61, %v2050_v57  ;;  %v2456_v56 = vmul.f32 %v2217_v50, %v2150_v7  ;;  %v628_v29 = vmul.f32 %v2081_v21, %v2083_v22  ;;  %v594_v60 = vmul.f32 %v2129_v58, %v2436_v33 }
 0x1dd   :  { %v2458_v39 = vadd.f32 %v757_v6, %v725_v42  ;;  %v536_v18 = vsel %vm530_vm5, %v2450_v34, %v2252_v1  ;;  %971 = vrot.lane.b32.xlu0 %v688_v62, %s1876_s3  ;;  %v626_v6 = vmul.f32 %v2057_v61, %v2085_v25  ;;  %v598_v42 = vmul.f32 %v2160_v10, %v2448_v8 }
 0x1de   :  { %3340 = vst [vmem:[#allocation59_spill] sm:$0xff] %v2456_v56  ;;  %v2471_v24 = vsel %vm2301_vm8, %v536_v18, 0.0  ;;  %v641_v50 = vadd.f32 %v625_v40, %v593_v59  ;;  %v2479_v7 = vpop.permute.xlu1 %518  ;;  %v644_v56 = vadd.f32 %v628_v29, %v596_v20  ;;  %v879_v58 = vmul.f32 %v2120_v49, %v2048_v55 }
 0x1df   :  { %3341 = vst [vmem:[#allocation60_spill] sm:$0xff] %v2458_v39  ;;  %3342 = vst [vmem:[#allocation61_spill] sm:$0xff] %v2471_v24  ;;  %v676_v39 = vmul.f32 %v2166_v12, %v2471_v24  ;;  %v674_v18 = vmul.f32 %v2200_v32, %v2380_v0  ;;  %v630_v61 = vmul.f32 %v2081_v21, %v2093_v28 }
 0x1e0   :  { %v689_v62 = vadd.f32 %v673_v53, %v641_v50  ;;  %v2485_v59 = vpop.permute.xlu0 %524  ;;  %v880_v40 = vmul.f32 %v2120_v49, %v2074_v14  ;;  %v884_v55 = vmul.f32 %v2178_v27, %v2083_v22  ;;  %v2499_v32 = vmul.f32 %v2120_v49, %v2050_v57 }
 0x1e1   :  { %v544_v20 = vsel %vm530_vm5, %v2485_v59, %v2241_v13  ;;  %v692_v29 = vadd.f32 %v676_v39, %v644_v56  ;;  %v847_v50 = vmul.f32 %v2112_v43, %v2288_v15  ;;  %v642_v53 = vadd.f32 %v626_v6, %v594_v60 }
 0x1e2   :  { %979 = vrot.lane.b32.xlu0 %v689_v62, %s1876_s3  ;;  %v2506_v14 = vsel %vm2348_vm10, %v544_v20, 0.0  ;;  %v886_v56 = vmul.f32 %v2178_v27, %v2093_v28  ;;  %v852_v22 = vmul.f32 %v2192_v48, %v2403_v38  ;;  %v2515_v39 = vpop.permute.xlu1 %427  ;;  %v646_v15 = vadd.f32 %v630_v61, %v598_v42 }
 0x1e3   :  { %v678_v57 = vmul.f32 %v2166_v12, %v2506_v14  ;;  %973 = vrot.lane.b32.xlu1 %v692_v29, %s1876_s3  ;;  %v2519_v62 = vmul.f32 %v2120_v49, %v2085_v25  ;;  %v720_v60 = vmul.f32 %v2208_v37, %v2338_v35  ;;  %v927_v28 = vmul.f32 %v2190_v30, %v2328_v16 }
 0x1e4   :  { %v690_v6 = vadd.f32 %v674_v18, %v642_v53  ;;  %v434_v20 = vpop.permute.xlu0 %433  ;;  %v632_v38 = vmul.f32 %v2154_v46, %v2141_v3  ;;  %v932_v29 = vmul.f32 %v2215_v47, %v2471_v24  ;;  %v848_v16 = vmul.f32 %v2112_v43, %v2338_v35 }
 0x1e5   :  { %v460_v42 = vsel %vm453_vm2, %v434_v20, %v2394_v9  ;;  %v464_v25 = vsel %vm453_vm2, %v2352_v63, %v434_v20  ;;  %v694_v49 = vadd.f32 %v678_v57, %v646_v15  ;;  %v895_v53 = vadd.f32 %v879_v58, %v847_v50 }
 0x1e6   :  { %987 = vrot.lane.b32.xlu0 %v690_v6, %s1876_s3  ;;  %v2540_v18 = vsel %vm2291_vm6, %v464_v25, 0.0  ;;  %v2544_v61 = vsel %vm2248_vm3, %v460_v42, 0.0  ;;  %v854_v24 = vmul.f32 %v2192_v48, %v2448_v8  ;;  %v2557_v15 = vpop.permute.xlu1 %443  ;;  %v900_v6 = vadd.f32 %v884_v55, %v852_v22  ;;  %v3346_v42 = vld [vmem:[#allocation16_spill] sm:$0xff] }
 0x1e7   :  { %3343 = vst [vmem:[#allocation62_spill] sm:$0xff] %v2544_v61  ;;  %v2550_v57 = vmul.f32 %v2229_v54, %v2540_v18  ;;  %v2554_v35 = vmul.f32 %v2229_v54, %v2544_v61  ;;  %989 = vrot.lane.b32.xlu1 %v694_v49, %s1876_s3  ;;  %v928_v20 = vmul.f32 %v2190_v30, %v2332_v17 }
 0x1e8   :  { %v943_v58 = vadd.f32 %v927_v28, %v895_v53  ;;  %v450_v50 = vpop.permute.xlu0 %449  ;;  %v2563_v25 = vmul.f32 %v2081_v21, %v3346_v42  ;;  %v934_v61 = vmul.f32 %v2215_v47, %v2506_v14  ;;  %v948_v17 = vadd.f32 %v932_v29, %v900_v6  ;;  %v3350_v53 = vld [vmem:[#allocation25_spill] sm:$0xff] }
 0x1e9   :  { %3344 = vst [vmem:[#allocation63_spill] sm:$0xff] %v2550_v57  ;;  %3345 = vst [vmem:[#allocation64_spill] sm:$0xff] %v2554_v35  ;;  %v768_v57 = vadd.f32 %v3347_v51, %v720_v60  ;;  %v456_v49 = vsel %vm453_vm2, %v2394_v9, %v450_v50  ;;  %v468_v55 = vsel %vm453_vm2, %v450_v50, %v2352_v63 }
 0x1ea   :  { %v849_v22 = vmul.f32 %v2112_v43, %v2260_v5  ;;  %1056 = vrot.lane.b32.xlu0 %v943_v58, %s1877_s29  ;;  %v2579_v51 = vsel %vm2267_vm4, %v468_v55, 0.0  ;;  %v2583_v60 = vsel %vm2382_vm11, %v456_v49, 0.0  ;;  %v896_v9 = vadd.f32 %v880_v40, %v848_v16  ;;  %v2596_v29 = vpop.permute.xlu1 %504  ;;  %v3353_v49 = vld [vmem:[#allocation50_spill] sm:$0xff] }
 0x1eb   :  { %3349 = vst [vmem:[#allocation16_spill] sm:$0xff] %v2583_v60  ;;  %v600_v35 = vmul.f32 %v3350_v53, %v2540_v18  ;;  %v2589_v63 = vmul.f32 %v2229_v54, %v2579_v51  ;;  %v2593_v5 = vmul.f32 %v2229_v54, %v2583_v60  ;;  %1066 = vrot.lane.b32.xlu1 %v948_v17, %s1877_s29 }
 0x1ec   :  { %v902_v6 = vadd.f32 %v886_v56, %v854_v24  ;;  %v722_v58 = vmul.f32 %v2208_v37, %v2436_v33  ;;  %v929_v40 = vmul.f32 %v2190_v30, %v2376_v44  ;;  %v944_v16 = vadd.f32 %v928_v20, %v896_v9  ;;  %v2602_v50 = vpop.permute.xlu0 %510  ;;  %v3355_v56 = vld [vmem:[#allocation24_spill] sm:$0xff]  ;;  %v3357_v9 = vld [vmem:[#allocation30_spill] sm:$0xff] }
 0x1ed   :  { %3351 = vst [vmem:[#allocation43_spill] sm:$0xff] %v2589_v63  ;;  %3352 = vst [vmem:[#allocation40_spill] sm:$0xff] %v2593_v5  ;;  %v2605_v55 = vadd.f32 %v3353_v49, %v768_v57  ;;  %v540_v54 = vsel %vm530_vm5, %v2241_v13, %v2450_v34  ;;  %v537_v24 = vsel %vm530_vm5, %v2602_v50, %v2479_v7  ;;  %v3359_v49 = vld [vmem:[#allocation42_spill] sm:$0xff] }
 0x1ee   :  { %v950_v37 = vadd.f32 %v934_v61, %v902_v6  ;;  %v634_v44 = vmul.f32 %v2154_v46, %v3355_v56  ;;  %v850_v20 = vmul.f32 %v2112_v43, %v2436_v33  ;;  %1064 = vrot.lane.b32.xlu0 %v944_v16, %s1877_s29  ;;  %v2622_v57 = vsel %vm2301_vm8, %v537_v24, 0.0  ;;  %v2634_v33 = vpop.permute.xlu1 %520 }
 0x1ef   :  { %3354 = vst [vmem:[#allocation25_spill] sm:$0xff] %v2605_v55  ;;  %3356 = vst [vmem:[#allocation50_spill] sm:$0xff] %v2622_v57  ;;  %v897_v13 = vadd.f32 %v2499_v32, %v849_v22  ;;  %v629_v34 = vmul.f32 %v2081_v21, %v2072_v11  ;;  %v930_v61 = vmul.f32 %v2190_v30, %v2380_v0  ;;  %v2638_v32 = vsel %vm2297_vm7, %v540_v54, 0.0  ;;  %v3361_v0 = vld [vmem:[#allocation51_spill] sm:$0xff]  ;;  %v3363_v54 = vld [vmem:[#allocation48_spill] sm:$0xff] }
 0x1f0   :  { %v602_v17 = vmul.f32 %v3350_v53, %v2583_v60  ;;  %v680_v43 = vmul.f32 %v3357_v9, %v2622_v57  ;;  %1082 = vrot.lane.b32.xlu1 %v950_v37, %s1877_s29  ;;  %v648_v6 = vadd.f32 %v632_v38, %v600_v35  ;;  %v2640_v21 = vpop.permute.xlu0 %526  ;;  %v2644_v30 = vadd.f32 %v2388_v19, %v3359_v49  ;;  %v3362_v38 = vld [vmem:[#allocation29_spill] sm:$0xff] }
 0x1f1   :  { %v945_v22 = vadd.f32 %v929_v40, %v897_v13  ;;  %v770_v24 = vadd.f32 %v3361_v0, %v722_v58  ;;  %v545_v37 = vsel %vm530_vm5, %v2640_v21, %v2442_v45  ;;  %v888_v35 = vmul.f32 %v3362_v38, %v2141_v3  ;;  %v3369_v60 = vld [vmem:[#allocation53_spill] sm:$0xff] }
 0x1f2   :  { %3360 = vst [vmem:[#allocation24_spill] sm:$0xff] %v2644_v30  ;;  %v696_v55 = vadd.f32 %v680_v43, %v648_v6  ;;  %v883_v40 = vmul.f32 %v2178_v27, %v3346_v42  ;;  %v595_v13 = vmul.f32 %v2160_v10, %v3363_v54  ;;  %v532_v19 = vsel %vm530_vm5, %v2252_v1, %v2485_v59  ;;  %v3365_v42 = vld [vmem:[#allocation28_spill] sm:$0xff]  ;;  %v436_v1 = vpop.permute.xlu1 %435  ;;  %v3366_v30 = vld [vmem:[#allocation47_spill] sm:$0xff] }
 0x1f3   :  { %1072 = vrot.lane.b32.xlu0 %v945_v22, %s1877_s29  ;;  %v2664_v58 = vsel %vm2348_vm10, %v545_v37, 0.0  ;;  %v898_v43 = vadd.f32 %v2519_v62, %v850_v20  ;;  %v675_v6 = vmul.f32 %v2166_v12, %v2638_v32  ;;  %v856_v49 = vmul.f32 %v3365_v42, %v2540_v18  ;;  %v3367_v62 = vld [vmem:[#allocation49_spill] sm:$0xff] }
 0x1f4   :  { %3364 = vst [vmem:[#allocation30_spill] sm:$0xff] %v2664_v58  ;;  %v682_v0 = vmul.f32 %v3357_v9, %v2664_v58  ;;  %975 = vrot.lane.b32.xlu1 %v696_v55, %s1876_s3  ;;  %v650_v59 = vadd.f32 %v634_v44, %v602_v17  ;;  %v461_v37 = vsel %vm453_vm2, %v436_v1, %v2557_v15  ;;  %v2686_v63 = vsel %vm2310_vm9, %v532_v19, 0.0  ;;  %v3372_v55 = vld [vmem:[#allocation33_spill] sm:$0xff] }
 0x1f5   :  { %v946_v22 = vadd.f32 %v930_v61, %v898_v43  ;;  %v2679_v20 = vadd.f32 %v3367_v62, %v3366_v30  ;;  %v2682_v5 = vadd.f32 %v3369_v60, %v770_v24  ;;  %v936_v58 = vmul.f32 %v3372_v55, %v2622_v57  ;;  %v3373_v60 = vld [vmem:[#allocation34_spill] sm:$0xff]  ;;  %v3382_v57 = vld [vmem:[#allocation36_spill] sm:$0xff] }
 0x1f6   :  { %v2692_v44 = vsel %vm2248_vm3, %v461_v37, 0.0  ;;  %v698_v61 = vadd.f32 %v682_v0, %v650_v59  ;;  %v597_v17 = vmul.f32 %v2160_v10, %v2428_v52  ;;  %v643_v24 = vadd.f32 %v2563_v25, %v595_v13  ;;  %v452_v43 = vpop.permute.xlu1 %451  ;;  %v3374_v37 = vld [vmem:[#allocation17_spill] sm:$0xff]  ;;  %v3375_v59 = vld [vmem:[#allocation19_spill] sm:$0xff] }
 0x1f7   :  { %3368 = vst [vmem:[#allocation45_spill] sm:$0xff] %v2679_v20  ;;  %3370 = vst [vmem:[#allocation42_spill] sm:$0xff] %v2682_v5  ;;  %1080 = vrot.lane.b32.xlu0 %v946_v22, %s1877_s29  ;;  %v733_v30 = vmul.f32 %v3373_v60, %v2692_v44  ;;  %v885_v19 = vmul.f32 %v2178_v27, %v2072_v11  ;;  %v904_v26 = vadd.f32 %v888_v35, %v856_v49  ;;  %v3376_v25 = vld [vmem:[#allocation59_spill] sm:$0xff]  ;;  %v3377_v5 = vld [vmem:[#allocation20_spill] sm:$0xff] }
 0x1f8   :  { %991 = vrot.lane.b32.xlu1 %v698_v61, %s1876_s3  ;;  %v635_v0 = vmul.f32 %v3374_v37, %v2138_v41  ;;  %v631_v10 = vmul.f32 %v2154_v46, %v3375_v59  ;;  %v636_v22 = vmul.f32 %v3374_v37, %v2175_v23  ;;  %v677_v62 = vmul.f32 %v2166_v12, %v2686_v63 }
 0x1f9   :  { %v2712_v13 = vadd.f32 %v3376_v25, %v733_v30  ;;  %v691_v11 = vadd.f32 %v675_v6, %v643_v24  ;;  %v469_v27 = vsel %vm453_vm2, %v452_v43, %v2515_v39  ;;  %v851_v35 = vmul.f32 %v2192_v48, %v3363_v54  ;;  %v3378_v30 = vld [vmem:[#allocation23_spill] sm:$0xff]  ;;  %v3380_v25 = vld [vmem:[#allocation32_spill] sm:$0xff] }
 0x1fa   :  { %v2721_v49 = vsel %vm2267_vm4, %v469_v27, 0.0  ;;  %v952_v61 = vadd.f32 %v936_v58, %v904_v26  ;;  %v2725_v20 = vmul.f32 %v2154_v46, %v3377_v5  ;;  %v645_v6 = vadd.f32 %v629_v34, %v597_v17  ;;  %v3379_v54 = vld [vmem:[#allocation27_spill] sm:$0xff]  ;;  %v3381_v27 = vld [vmem:[#allocation54_spill] sm:$0xff]  ;;  %v513_v17 = vpop.permute.xlu1 %512 }
 0x1fb   :  { %965 = vrot.lane.b32.xlu0 %v691_v11, %s1876_s3  ;;  %v731_v12 = vmul.f32 %v3373_v60, %v2721_v49  ;;  %v2732_v24 = vmul.f32 %v3374_v37, %v3378_v30  ;;  %v766_v28 = vmul.f32 %v3380_v25, %v3379_v54  ;;  %v724_v58 = vmul.f32 %v3382_v57, %v3381_v27  ;;  %v3383_v25 = vld [vmem:[#allocation57_spill] sm:$0xff] }
 0x1fc   :  { %v853_v46 = vmul.f32 %v2192_v48, %v2428_v52  ;;  %v931_v26 = vmul.f32 %v2215_v47, %v2638_v32  ;;  %v465_v34 = vsel %vm453_vm2, %v2515_v39, %v436_v1  ;;  %1068 = vrot.lane.b32.xlu1 %v952_v61, %s1877_s29  ;;  %v541_v11 = vsel %vm530_vm5, %v2442_v45, %v2602_v50 }
 0x1fd   :  { %v779_v27 = vadd.f32 %v3383_v25, %v731_v12  ;;  %v693_v30 = vadd.f32 %v677_v62, %v645_v6  ;;  %v542_v48 = vsel %vm530_vm5, %v2596_v29, %v513_v17  ;;  %v726_v52 = vmul.f32 %v3382_v57, %v2448_v8  ;;  %v3385_v57 = vld [vmem:[#allocation22_spill] sm:$0xff] }
 0x1fe   :  { %v538_v39 = vsel %vm530_vm5, %v513_v17, %v2634_v33  ;;  %v2761_v1 = vsel %vm2297_vm7, %v542_v48, 0.0  ;;  %v899_v61 = vadd.f32 %v883_v40, %v851_v35  ;;  %v933_v45 = vmul.f32 %v2215_v47, %v2686_v63  ;;  %v529_v35 = vpop.permute.xlu1 %528 }
 0x1ff   :  { %v2767_v62 = vsel %vm2291_vm6, %v465_v34, 0.0  ;;  %v457_v8 = vsel %vm453_vm2, %v2557_v15, %v452_v43  ;;  %v603_v12 = vmul.f32 %v3385_v57, %v2721_v49  ;;  %981 = vrot.lane.b32.xlu0 %v693_v30, %s1876_s3  ;;  %v2777_v6 = vsel %vm2297_vm7, %v541_v11, 0.0  ;;  %v3386_v43 = vld [vmem:[#allocation18_spill] sm:$0xff] }
 0x200   :  { %v533_v47 = vsel %vm530_vm5, %v2479_v7, %v2640_v21  ;;  %v947_v40 = vadd.f32 %v931_v26, %v899_v61  ;;  %v901_v34 = vadd.f32 %v885_v19, %v853_v46  ;;  %v2785_v15 = vsel %vm2301_vm8, %v538_v39, 0.0  ;;  %v3387_v46 = vld [vmem:[#allocation62_spill] sm:$0xff]  ;;  %v3388_v61 = vld [vmem:[#allocation35_spill] sm:$0xff] }
 0x201   :  { %v683_v17 = vmul.f32 %v3386_v43, %v2761_v1  ;;  %v534_v16 = vsel %vm530_vm5, %v2634_v33, %v529_v35  ;;  %v546_v30 = vsel %vm530_vm5, %v529_v35, %v2596_v29  ;;  %v599_v7 = vmul.f32 %v3350_v53, %v2579_v51  ;;  %v3390_v35 = vld [vmem:[#allocation56_spill] sm:$0xff] }
 0x202   :  { %v604_v21 = vmul.f32 %v3385_v57, %v2767_v62  ;;  %v2801_v31 = vsel %vm2382_vm11, %v457_v8, 0.0  ;;  %v2805_v19 = vsel %vm2310_vm9, %v534_v16, 0.0  ;;  %v601_v33 = vmul.f32 %v3350_v53, %v3387_v46 }
 0x203   :  { %v679_v29 = vmul.f32 %v3357_v9, %v2777_v6  ;;  %1058 = vrot.lane.b32.xlu0 %v947_v40, %s1877_s29  ;;  %v949_v26 = vadd.f32 %v933_v45, %v901_v34  ;;  %v651_v11 = vadd.f32 %v635_v0, %v603_v12  ;;  %v2814_v25 = vsel %vm2310_vm9, %v533_v47, 0.0 }
 0x204   :  { %v732_v4 = vmul.f32 %v3373_v60, %v2767_v62  ;;  %v684_v48 = vmul.f32 %v3386_v43, %v2785_v15  ;;  %v2822_v53 = vsel %vm2348_vm10, %v546_v30, 0.0  ;;  %v734_v39 = vmul.f32 %v3373_v60, %v2801_v31  ;;  %v3389_v60 = vld [vmem:[#allocation55_spill] sm:$0xff] }
 0x205   :  { %v811_v0 = vmul.f32 %v3388_v61, %v2761_v1  ;;  %v813_v18 = vmul.f32 %v3388_v61, %v2805_v19  ;;  %v699_v45 = vadd.f32 %v683_v17, %v651_v11  ;;  %v605_v50 = vmul.f32 %v3385_v57, %v2692_v44  ;;  %v3391_v11 = vld [vmem:[#allocation58_spill] sm:$0xff] }
 0x206   :  { %v812_v8 = vmul.f32 %v3388_v61, %v2785_v15  ;;  %v647_v12 = vadd.f32 %v631_v10, %v599_v7  ;;  %v652_v36 = vadd.f32 %v636_v22, %v604_v21  ;;  %v814_v47 = vmul.f32 %v3388_v61, %v2822_v53 }
 0x207   :  { %1074 = vrot.lane.b32.xlu0 %v949_v26, %s1877_s29  ;;  %969 = vrot.lane.b32.xlu1 %v699_v45, %s1876_s3  ;;  %v772_v40 = vadd.f32 %v3389_v60, %v724_v58  ;;  %v774_v34 = vadd.f32 %v3390_v35, %v726_v52  ;;  %v681_v17 = vmul.f32 %v3357_v9, %v2814_v25  ;;  %vm1249_vm2 = vcmask 7168  }
 0x208   :  { %v695_v16 = vadd.f32 %v679_v29, %v647_v12  ;;  %v700_v30 = vadd.f32 %v684_v48, %v652_v36  ;;  %v780_v2 = vadd.f32 %v3391_v11, %v732_v4  ;;  %v685_v10 = vmul.f32 %v3386_v43, %v2805_v19 }
 0x209   :  { %v2846_v22 = vadd.f32 %v813_v18, %v2712_v13  ;;  %v782_v7 = vadd.f32 %v766_v28, %v734_v39  ;;  %v2848_v21 = vadd.f32 %v811_v0, %v779_v27  ;;  %v857_v58 = vmul.f32 %v3365_v42, %v3387_v46  ;;  %v3393_v39 = vld [vmem:[#allocation21_spill] sm:$0xff] }
 0x20a   :  { %v855_v52 = vmul.f32 %v3365_v42, %v2579_v51  ;;  %v649_v9 = vadd.f32 %v2725_v20, %v601_v33  ;;  %v2855_v29 = vadd.f32 %v812_v8, %v780_v2  ;;  %v606_v26 = vmul.f32 %v3385_v57, %v2801_v31  ;;  %v3392_v51 = vld [vmem:[#allocation26_spill] sm:$0xff]  ;;  %v745_v33 = vpop.permute.xlu0 %744 }
 0x20b   :  { %967 = vrot.lane.b32.xlu0 %v695_v16, %s1876_s3  ;;  %977 = vrot.lane.b32.xlu1 %v700_v30, %s1876_s3  ;;  %v653_v13 = vadd.f32 %v2732_v24, %v605_v50  ;;  %v2862_v28 = vadd.f32 %v814_v47, %v782_v7  ;;  %v935_v27 = vmul.f32 %v3372_v55, %v2777_v6  ;;  %v3395_v16 = vld [vmem:[#allocation61_spill] sm:$0xff]  ;;  %vm1424_vm7 = vcmask 261120  }
 0x20c   :  { %v859_v46 = vmul.f32 %v3392_v51, %v2721_v49  ;;  %v887_v2 = vmul.f32 %v3362_v38, %v3375_v59  ;;  %v889_v20 = vmul.f32 %v3362_v38, %v3377_v5  ;;  %v638_v57 = vmul.f32 %v3374_v37, %v3379_v54  ;;  %v3394_v37 = vld [vmem:[#allocation31_spill] sm:$0xff] }
 0x20d   :  { %v686_v24 = vmul.f32 %v3386_v43, %v2822_v53  ;;  %v697_v4 = vadd.f32 %v681_v17, %v649_v9  ;;  %v701_v48 = vadd.f32 %v685_v10, %v653_v13  ;;  %v892_v61 = vmul.f32 %v3393_v39, %v2175_v23  ;;  %v3398_v9 = vld [vmem:[#allocation43_spill] sm:$0xff] }
 0x20e   :  { %v891_v49 = vmul.f32 %v3393_v39, %v2138_v41  ;;  %v903_v0 = vadd.f32 %v887_v2, %v855_v52  ;;  %v905_v18 = vadd.f32 %v889_v20, %v857_v58  ;;  %v937_v45 = vmul.f32 %v3372_v55, %v2814_v25  ;;  %v3401_v2 = vld [vmem:[#allocation40_spill] sm:$0xff] }
 0x20f   :  { %v654_v50 = vadd.f32 %v638_v57, %v606_v26  ;;  %v939_v8 = vmul.f32 %v3394_v37, %v2761_v1  ;;  %983 = vrot.lane.b32.xlu0 %v697_v4, %s1876_s3  ;;  %985 = vrot.lane.b32.xlu1 %v701_v48, %s1876_s3  ;;  %v860_v43 = vmul.f32 %v3392_v51, %v2767_v62  ;;  %v789_v17 = vpop.permute.xlu1 %788  ;;  %v3403_v4 = vld [vmem:[#allocation30_spill] sm:$0xff] }
 0x210   :  { %v907_v23 = vadd.f32 %v891_v49, %v859_v46  ;;  %v759_v12 = vmul.f32 %v745_v33, %v3375_v59  ;;  %v951_v41 = vadd.f32 %v935_v27, %v903_v0  ;;  %v760_v47 = vmul.f32 %v745_v33, %v2141_v3  ;;  %v3400_v27 = vld [vmem:[#allocation64_spill] sm:$0xff] }
 0x211   :  { %v702_v36 = vadd.f32 %v686_v24, %v654_v50  ;;  %v761_v60 = vmul.f32 %v745_v33, %v3377_v5  ;;  %v762_v35 = vmul.f32 %v745_v33, %v3355_v56  ;;  %v803_v1 = vmul.f32 %v789_v17, %v2638_v32  ;;  %v3396_v5 = vld [vmem:[#allocation52_spill] sm:$0xff]  ;;  %v3402_v24 = vld [vmem:[#allocation50_spill] sm:$0xff]  ;;  %v3404_v50 = vld [vmem:[#allocation23_spill] sm:$0xff] }
 0x212   :  { %v804_v30 = vmul.f32 %v789_v17, %v3395_v16  ;;  %v805_v11 = vmul.f32 %v789_v17, %v2686_v63  ;;  %v806_v62 = vmul.f32 %v789_v17, %v2506_v14  ;;  %v940_v59 = vmul.f32 %v3394_v37, %v2785_v15  ;;  %v3397_v32 = vld [vmem:[#allocation60_spill] sm:$0xff]  ;;  %v3399_v15 = vld [vmem:[#allocation63_spill] sm:$0xff] }
 0x213   :  { %v955_v10 = vadd.f32 %v939_v8, %v907_v23  ;;  %1060 = vrot.lane.b32.xlu0 %v951_v41, %s1877_s29  ;;  %993 = vrot.lane.b32.xlu1 %v702_v36, %s1876_s3  ;;  %v953_v3 = vadd.f32 %v937_v45, %v905_v18  ;;  %v2901_v7 = vadd.f32 %v803_v1, %v3396_v5  ;;  %v793_v14 = vpop.permute.xlu1 %792  ;;  %v3405_v36 = vld [vmem:[#allocation16_spill] sm:$0xff] }
 0x214   :  { %v2903_v58 = vadd.f32 %v804_v30, %v772_v40  ;;  %v2906_v52 = vadd.f32 %v805_v11, %v3397_v32  ;;  %v2908_v63 = vadd.f32 %v806_v62, %v774_v34  ;;  %v775_v26 = vadd.f32 %v759_v12, %v3398_v9  ;;  %v3411_v32 = vld [vmem:[#allocation39_spill] sm:$0xff]  ;;  %v3412_v9 = vld [vmem:[#allocation45_spill] sm:$0xff] }
 0x215   :  { %v776_v13 = vadd.f32 %v760_v47, %v3399_v15  ;;  %v777_v46 = vadd.f32 %v761_v60, %v3400_v27  ;;  %v778_v20 = vadd.f32 %v762_v35, %v3401_v2  ;;  %v807_v57 = vmul.f32 %v793_v14, %v2777_v6 }
 0x216   :  { %v808_v33 = vmul.f32 %v793_v14, %v3402_v24  ;;  %v809_v40 = vmul.f32 %v793_v14, %v2814_v25  ;;  %v810_v48 = vmul.f32 %v793_v14, %v3403_v4  ;;  %v861_v34 = vmul.f32 %v3392_v51, %v2692_v44 }
 0x217   :  { %v908_v49 = vadd.f32 %v892_v61, %v860_v43  ;;  %1076 = vrot.lane.b32.xlu0 %v953_v3, %s1877_s29  ;;  %1062 = vrot.lane.b32.xlu1 %v955_v10, %s1877_s29  ;;  %v2922_v0 = vadd.f32 %v807_v57, %v775_v26  ;;  %v893_v25 = vmul.f32 %v3393_v39, %v3404_v50  ;;  %v3410_v3 = vld [vmem:[#allocation38_spill] sm:$0xff]  ;;  %v328_v14 = vand.u32 255, %v3411_v32 }
 0x218   :  { %v2924_v18 = vadd.f32 %v808_v33, %v776_v13  ;;  %v2926_v45 = vadd.f32 %v809_v40, %v777_v46  ;;  %v2928_v6 = vadd.f32 %v810_v48, %v778_v20  ;;  %v941_v44 = vmul.f32 %v3394_v37, %v2805_v19  ;;  %v3417_v33 = vld [vmem:[#allocation41_spill] sm:$0xff] }
 0x219   :  { %v956_v8 = vadd.f32 %v940_v59, %v908_v49  ;;  %v909_v61 = vadd.f32 %v893_v25, %v861_v34  ;;  %v862_v43 = vmul.f32 %v3392_v51, %v2801_v31  ;;  %v894_v23 = vmul.f32 %v3393_v39, %v3379_v54  ;;  %v3418_v34 = vld [vmem:[#allocation25_spill] sm:$0xff] }
 0x21a   :  { %v942_v12 = vmul.f32 %v3394_v37, %v2822_v53  ;;  %v858_v47 = vmul.f32 %v3365_v42, %v3405_v36  ;;  %v890_v19 = vmul.f32 %v3362_v38, %v3355_v56  ;;  %v938_v31 = vmul.f32 %v3372_v55, %v3403_v4  ;;  %v2950_v53 = vld [vmem:[#allocation8] ss:$0 sm:$0xff]  ;;  %v3407_v38 = vld [vmem:[#allocation37_spill] sm:$0xff] }
 0x21b   :  { %1070 = vrot.lane.b32.xlu1 %v956_v8, %s1877_s29  ;;  %v957_v41 = vadd.f32 %v941_v44, %v909_v61  ;;  %v910_v60 = vadd.f32 %v894_v23, %v862_v43  ;;  %v3406_v42 = vmov 2   ;;  %v321_v1 = vand.u32 255, %v3407_v38  ;;  %v3421_v23 = vld [vmem:[#allocation24_spill] sm:$0xff] }
 0x21c   :  { %v906_v35 = vadd.f32 %v890_v19, %v858_v47  ;;  %vm995_vm12 = vcmp.lt.s32.totalorder %v3407_v38, 16  ;;  %v335_v5 = vand.u32 255, %v3410_v3  ;;  %vm1088_vm14 = vcmp.lt.s32.totalorder %v3407_v38, 112  ;;  %v3422_v47 = vld [vmem:[#allocation42_spill] sm:$0xff] }
 0x21d   :  { %v958_v51 = vadd.f32 %v942_v12, %v910_v60  ;;  %vm2956_vm13 = vcmp.ge.s32.totalorder %v321_v1, 16  ;;  %vm2982_vm0 = vcmp.lt.s32.totalorder %v328_v14, 240  ;;  %v342_v40 = vand.u32 255, %v3417_v33 }
 0x21e   :  { %v954_v54 = vadd.f32 %v938_v31, %v906_v35  ;;  %vm2974_vm15 = vcmp.ge.s32.totalorder %v335_v5, 16 }
 0x21f   :  { %1078 = vrot.lane.b32.xlu1 %v957_v41, %s1877_s29  ;;  %vm2996_vm1 = vcmp.lt.s32.totalorder %v342_v40, 240 }
 0x223   :  { %1086 = vrot.lane.b32.xlu1 %v958_v51, %s1877_s29 }
 0x227   :  { %1084 = vrot.lane.b32.xlu1 %v954_v54, %s1877_s29 }
 0x22b   :  { %1287 = vperm.xlu1 %1615, %v2950_v53  }
 0x22f   :  { %1617 = vset.pattern.permute.xlu1 %v3406_v42 }
 0x24b   :  { %v964_v39 = vpop.permute.xlu0 %963 }
 0x24f   :  { %v972_v37 = vpop.permute.xlu0 %971 }
 0x250   :  { %v1004_v27 = vsel %vm995_vm12, %v964_v39, %v972_v37 }
 0x251   :  { %v1037_v49 = vadd.f32 %v1004_v27, %v3418_v34 }
 0x254   :  { %v980_v17 = vpop.permute.xlu0 %979 }
 0x255   :  { %v974_v56 = vpop.permute.xlu1 %973  ;;  %v1000_v2 = vsel %vm995_vm12, %v972_v37, %v980_v17 }
 0x256   :  { %v1022_v50 = vsel %vm2974_vm15, %v1000_v2, 0.0 }
 0x257   :  { %v1038_v12 = vadd.f32 %v1022_v50, %v3421_v23 }
 0x258   :  { %v988_v55 = vpop.permute.xlu0 %987 }
 0x259   :  { %v990_v16 = vpop.permute.xlu1 %989  ;;  %v1008_v11 = vsel %vm995_vm12, %v988_v55, %v964_v39  ;;  %v996_v8 = vsel %vm995_vm12, %v980_v17, %v988_v55 }
 0x25a   :  { %v1020_v59 = vsel %vm2956_vm13, %v1008_v11, 0.0  ;;  %v1039_v60 = vadd.f32 %v996_v8, %v3422_v47 }
 0x25b   :  { %v1036_v26 = vadd.f32 %v1020_v59, %v3412_v9 }
 0x25c   :  { %v1057_v62 = vpop.permute.xlu0 %1056 }
 0x25d   :  { %v2964_v10 = vpop.permute.xlu1 %1066 }
 0x260   :  { %v1065_v15 = vpop.permute.xlu0 %1064 }
 0x261   :  { %v1097_v13 = vsel %vm1088_vm14, %v1057_v62, %v1065_v15 }
 0x262   :  { %v1129_v20 = vadd.f32 %v1097_v13, %v1036_v26  ;;  %v2980_v57 = vpop.permute.xlu1 %1082 }
 0x264   :  { %v1161_v4 = vmul.f32 0.70710677, %v1129_v20  ;;  %v1145_v32 = vmul.f32 0.5, %v1129_v20 }
 0x265   :  { %v1073_v48 = vpop.permute.xlu0 %1072 }
 0x266   :  { %v1093_v25 = vsel %vm1088_vm14, %v1065_v15, %v1073_v48  ;;  %1656 = verf.f32 %v1161_v4  ;;  %v3001_v36 = vpop.permute.xlu1 %975 }
 0x267   :  { %v1114_v44 = vsel %vm2982_vm0, %v1093_v25, 0.0 }
 0x268   :  { %v1130_v61 = vadd.f32 %v1114_v44, %v1037_v49 }
 0x269   :  { %v1081_v41 = vpop.permute.xlu0 %1080 }
 0x26a   :  { %v1162_v19 = vmul.f32 0.70710677, %v1130_v61  ;;  %v1089_v31 = vsel %vm1088_vm14, %v1073_v48, %v1081_v41  ;;  %v1101_v51 = vsel %vm1088_vm14, %v1081_v41, %v1057_v62  ;;  %v3012_v55 = vpop.permute.xlu1 %991  ;;  %v1146_v40 = vmul.f32 0.5, %v1130_v61 }
 0x26b   :  { %v1116_v35 = vsel %vm2996_vm1, %v1101_v51, 0.0  ;;  %v1131_v54 = vadd.f32 %v1089_v31, %v1038_v12 }
 0x26c   :  { %1658 = verf.f32 %v1162_v19  ;;  %v1132_v42 = vadd.f32 %v1116_v35, %v1039_v60 }
 0x26d   :  { %v1163_v39 = vmul.f32 0.70710677, %v1131_v54  ;;  %v966_v37 = vpop.permute.xlu0 %965  ;;  %v1147_v31 = vmul.f32 0.5, %v1131_v54 }
 0x26e   :  { %v1164_v17 = vmul.f32 0.70710677, %v1132_v42  ;;  %v1009_v1 = vsel %vm995_vm12, %v990_v16, %v966_v37  ;;  %v1005_v14 = vsel %vm995_vm12, %v966_v37, %v974_v56  ;;  %v3023_v26 = vpop.permute.xlu1 %1068 }
 0x26f   :  { %1660 = verf.f32 %v1163_v39  ;;  %v1024_v62 = vsel %vm2956_vm13, %v1009_v1, 0.0  ;;  %v1041_v48 = vadd.f32 %v1005_v14, %v2903_v58  ;;  %v1148_v1 = vmul.f32 0.5, %v1132_v42 }
 0x270   :  { %1662 = verf.f32 %v1164_v17  ;;  %v1657_v59 = vpop.eup %1656  ;;  %v1040_v9 = vadd.f32 %v1024_v62, %v2901_v7 }
 0x271   :  { %v982_v11 = vpop.permute.xlu0 %981  ;;  %v1193_v13 = vadd.f32 1.0, %v1657_v59 }
 0x272   :  { %v997_v3 = vsel %vm995_vm12, %v982_v11, %v990_v16  ;;  %v1001_v5 = vsel %vm995_vm12, %v974_v56, %v982_v11 }
 0x273   :  { %v1026_v2 = vsel %vm2974_vm15, %v1001_v5, 0.0  ;;  %v1043_v33 = vadd.f32 %v997_v3, %v2908_v63  ;;  %v3043_v44 = vmul.f32 %v1193_v13, %v1145_v32 }
 0x274   :  { %v1042_v63 = vadd.f32 %v1026_v2, %v2906_v52 }
 0x275   :  { %v1059_v15 = vpop.permute.xlu0 %1058 }
 0x276   :  { %v1659_v27 = vpop.eup %1658  ;;  %v1098_v16 = vsel %vm1088_vm14, %v1059_v15, %v2964_v10  ;;  %v1102_v56 = vsel %vm1088_vm14, %v2980_v57, %v1059_v15 }
 0x277   :  { %v1120_v7 = vsel %vm2996_vm1, %v1102_v56, 0.0  ;;  %v3036_v20 = vadd.f32 %v1098_v16, %v1040_v9  ;;  %v1194_v4 = vadd.f32 1.0, %v1659_v27 }
 0x278   :  { %v1136_v34 = vadd.f32 %v1120_v7, %v1043_v33 }
 0x279   :  { %v1661_v49 = vpop.eup %1660  ;;  %v1165_v50 = vmul.f32 0.70710677, %v3036_v20  ;;  %v1075_v25 = vpop.permute.xlu0 %1074  ;;  %v3045_v23 = vmul.f32 %v1194_v4, %v1146_v40 }
 0x27a   :  { %v3041_v8 = vpop.permute.xlu1 %969  ;;  %v1663_v12 = vpop.eup %1662  ;;  %v1168_v41 = vmul.f32 0.70710677, %v1136_v34  ;;  %v1090_v61 = vsel %vm1088_vm14, %v1075_v25, %v2980_v57  ;;  %v1094_v58 = vsel %vm1088_vm14, %v2964_v10, %v1075_v25  ;;  %v1195_v52 = vadd.f32 1.0, %v1661_v49 }
 0x27b   :  { %1664 = verf.f32 %v1165_v50  ;;  %v1118_v47 = vsel %vm2982_vm0, %v1094_v58, 0.0  ;;  %v1135_v60 = vadd.f32 %v1090_v61, %v1042_v63  ;;  %v1225_v19 = vadd.f32 %v3045_v23, %v3043_v44 }
 0x27c   :  { %1666 = verf.f32 %v1168_v41  ;;  %v1134_v51 = vadd.f32 %v1118_v47, %v1041_v48  ;;  %v1196_v35 = vadd.f32 1.0, %v1663_v12  ;;  %v3057_v10 = vmul.f32 %v1195_v52, %v1147_v31 }
 0x27d   :  { %v1167_v39 = vmul.f32 0.70710677, %v1135_v60  ;;  %1226 = vadd.xlane.f32.xlu0 %v1225_v19  ;;  %v968_v57 = vpop.permute.xlu0 %967  ;;  %v1151_v56 = vmul.f32 0.5, %v1135_v60  ;;  %v1152_v48 = vmul.f32 0.5, %v1136_v34  ;;  %v1149_v61 = vmul.f32 0.5, %v3036_v20 }
 0x27e   :  { %v978_v37 = vpop.permute.xlu1 %977  ;;  %v1166_v17 = vmul.f32 0.70710677, %v1134_v51  ;;  %v1010_v11 = vsel %vm995_vm12, %v3012_v55, %v968_v57  ;;  %v3062_v59 = vmul.f32 %v1196_v35, %v1148_v1  ;;  %v1006_v27 = vsel %vm995_vm12, %v968_v57, %v3001_v36 }
 0x27f   :  { %1668 = verf.f32 %v1167_v39  ;;  %v1028_v3 = vsel %vm2956_vm13, %v1010_v11, 0.0  ;;  %v1045_v50 = vadd.f32 %v1006_v27, %v2924_v18  ;;  %v1150_v58 = vmul.f32 0.5, %v1134_v51 }
 0x280   :  { %1670 = verf.f32 %v1166_v17  ;;  %v1237_v5 = vadd.f32 %v3062_v59, %v3057_v10  ;;  %v1044_v32 = vadd.f32 %v1028_v3, %v2922_v0  ;;  %v1007_v39 = vsel %vm995_vm12, %v3041_v8, %v978_v37 }
 0x281   :  { %v984_v54 = vpop.permute.xlu0 %983  ;;  %v1049_v3 = vadd.f32 %v1007_v39, %v2855_v29 }
 0x282   :  { %v986_v62 = vpop.permute.xlu1 %985  ;;  %1238 = vadd.xlane.f32.xlu0 %v1237_v5  ;;  %v1002_v5 = vsel %vm995_vm12, %v3001_v36, %v984_v54  ;;  %v998_v29 = vsel %vm995_vm12, %v984_v54, %v3012_v55 }
 0x283   :  { %v1003_v57 = vsel %vm995_vm12, %v978_v37, %v986_v62  ;;  %v1030_v36 = vsel %vm2974_vm15, %v1002_v5, 0.0 }
 0x284   :  { %v1046_v54 = vadd.f32 %v1030_v36, %v2926_v45 }
 0x285   :  { %v1665_v42 = vpop.eup %1664  ;;  %v3069_v14 = vpop.permute.xlu0 %1060 }
 0x286   :  { %v994_v9 = vpop.permute.xlu1 %993  ;;  %v1667_v15 = vpop.eup %1666  ;;  %v1099_v13 = vsel %vm1088_vm14, %v3069_v14, %v3023_v26  ;;  %v1197_v49 = vadd.f32 1.0, %v1665_v42 }
 0x287   :  { %v3078_v2 = vadd.f32 %v1099_v13, %v1044_v32  ;;  %v1011_v33 = vsel %vm995_vm12, %v994_v9, %v3041_v8  ;;  %v1200_v0 = vadd.f32 1.0, %v1667_v15  ;;  %v1034_v8 = vsel %vm2974_vm15, %v1003_v57, 0.0 }
 0x288   :  { %v1032_v25 = vsel %vm2956_vm13, %v1011_v33, 0.0  ;;  %v3101_v31 = vmul.f32 %v1197_v49, %v1149_v61  ;;  %v999_v42 = vsel %vm995_vm12, %v986_v62, %v994_v9  ;;  %v1050_v13 = vadd.f32 %v1034_v8, %v2846_v22 }
 0x289   :  { %v1669_v16 = vpop.eup %1668  ;;  %v1169_v7 = vmul.f32 0.70710677, %v3078_v2  ;;  %v3084_v40 = vpop.permute.xlu0 %1076  ;;  %v3098_v18 = vmul.f32 %v1200_v0, %v1152_v48  ;;  %v1048_v30 = vadd.f32 %v1032_v25, %v2848_v21  ;;  %v1051_v0 = vadd.f32 %v999_v42, %v2862_v28 }
 0x28a   :  { %v1063_v4 = vpop.permute.xlu1 %1062  ;;  %v1671_v63 = vpop.eup %1670  ;;  %v1095_v12 = vsel %vm1088_vm14, %v3023_v26, %v3084_v40  ;;  %v1199_v41 = vadd.f32 1.0, %v1669_v16  ;;  %v1047_v22 = vadd.f32 %v998_v29, %v2928_v6  ;;  %v1153_v49 = vmul.f32 0.5, %v3078_v2 }
 0x28b   :  { %v1122_v52 = vsel %vm2982_vm0, %v1095_v12, 0.0  ;;  %v1198_v34 = vadd.f32 1.0, %v1671_v63  ;;  %1672 = verf.f32 %v1169_v7 }
 0x28c   :  { %v1138_v47 = vadd.f32 %v1122_v52, %v1045_v50  ;;  %v3096_v60 = vmul.f32 %v1199_v41, %v1151_v56 }
 0x28d   :  { %v3103_v26 = vmul.f32 %v1198_v34, %v1150_v58 }
 0x28e   :  { %v1071_v19 = vpop.permute.xlu1 %1070  ;;  %v1170_v35 = vmul.f32 0.70710677, %v1138_v47  ;;  %v1240_v51 = vadd.f32 %v3098_v18, %v3096_v60  ;;  %v1154_v25 = vmul.f32 0.5, %v1138_v47 }
 0x28f   :  { %v1100_v20 = vsel %vm1088_vm14, %v1063_v4, %v1071_v19  ;;  %v1228_v17 = vadd.f32 %v3103_v26, %v3101_v31 }
 0x290   :  { %v1141_v21 = vadd.f32 %v1100_v20, %v1048_v30  ;;  %1674 = verf.f32 %v1170_v35  ;;  %1241 = vadd.xlane.f32.xlu0 %v1240_v51 }
 0x291   :  { %1229 = vadd.xlane.f32.xlu1 %v1228_v17 }
 0x292   :  { %v1173_v1 = vmul.f32 0.70710677, %v1141_v21  ;;  %v1079_v11 = vpop.permute.xlu1 %1078  ;;  %v1157_v34 = vmul.f32 0.5, %v1141_v21 }
 0x293   :  { %v1096_v37 = vsel %vm1088_vm14, %v1071_v19, %v1079_v11 }
 0x294   :  { %v1126_v32 = vsel %vm2982_vm0, %v1096_v37, 0.0  ;;  %1676 = verf.f32 %v1173_v1 }
 0x295   :  { %v1142_v15 = vadd.f32 %v1126_v32, %v1049_v3  ;;  %v1673_v33 = vpop.eup %1672 }
 0x296   :  { %v1087_v27 = vpop.permute.xlu1 %1086  ;;  %v1201_v28 = vadd.f32 1.0, %v1673_v33  ;;  %v3423_v33 = vmov 0  }
 0x297   :  { %v1174_v16 = vmul.f32 0.70710677, %v1142_v15  ;;  %v1092_v24 = vsel %vm1088_vm14, %v1079_v11, %v1087_v27  ;;  %v1104_v62 = vsel %vm1088_vm14, %v1087_v27, %v1063_v4  ;;  %v1158_v47 = vmul.f32 0.5, %v1142_v15 }
 0x298   :  { %v1128_v9 = vsel %vm2996_vm1, %v1104_v62, 0.0  ;;  %v1143_v55 = vadd.f32 %v1092_v24, %v1050_v13  ;;  %v3152_v58 = vmul.f32 %v1201_v28, %v1153_v49  ;;  %v3424_v28 = vlaneseq }
 0x299   :  { %1678 = verf.f32 %v1174_v16  ;;  %v1144_v46 = vadd.f32 %v1128_v9, %v1051_v0 }
 0x29a   :  { %v1175_v56 = vmul.f32 0.70710677, %v1143_v55  ;;  %v1085_v7 = vpop.permute.xlu1 %1084  ;;  %v1675_v48 = vpop.eup %1674  ;;  %v1159_v42 = vmul.f32 0.5, %v1143_v55 }
 0x29b   :  { %v1176_v63 = vmul.f32 0.70710677, %v1144_v46  ;;  %v1091_v4 = vsel %vm1088_vm14, %v3084_v40, %v1085_v7  ;;  %v1103_v50 = vsel %vm1088_vm14, %v1085_v7, %v3069_v14  ;;  %v1202_v12 = vadd.f32 1.0, %v1675_v48 }
 0x29c   :  { %v1124_v45 = vsel %vm2996_vm1, %v1103_v50, 0.0  ;;  %v1139_v6 = vadd.f32 %v1091_v4, %v1046_v54  ;;  %1680 = verf.f32 %v1175_v56  ;;  %v1160_v32 = vmul.f32 0.5, %v1144_v46 }
 0x29d   :  { %v1140_v41 = vadd.f32 %v1124_v45, %v1047_v22  ;;  %v3154_v2 = vmul.f32 %v1202_v12, %v1154_v25  ;;  %1682 = verf.f32 %v1176_v63  ;;  %v1260_v48 = vshrl.u32 %v3424_v28, 7 }
 0x29e   :  { %v1171_v61 = vmul.f32 0.70710677, %v1139_v6  ;;  %v1677_v52 = vpop.eup %1676  ;;  %v1155_v1 = vmul.f32 0.5, %v1139_v6 }
 0x29f   :  { %v1172_v40 = vmul.f32 0.70710677, %v1140_v41  ;;  %v1231_v38 = vadd.f32 %v3154_v2, %v3152_v58  ;;  %v1205_v43 = vadd.f32 1.0, %v1677_v52  ;;  %v1156_v3 = vmul.f32 0.5, %v1140_v41 }
 0x2a0   :  { %1684 = verf.f32 %v1171_v61  ;;  %vm1268_vm3 = vcmp.lt.s32.totalorder %v1260_v48, 1  ;;  %vm1314_vm4 = vcmp.lt.s32.totalorder %v1260_v48, 7  ;;  %vm1273_vm6 = vcmp.ge.s32.totalorder %v1260_v48, 1 }
 0x2a1   :  { %1686 = verf.f32 %v1172_v40  ;;  %1232 = vadd.xlane.f32.xlu1 %v1231_v38  ;;  %v3158_v19 = vmul.f32 %v1205_v43, %v1157_v34 }
 0x2a3   :  { %v1679_v14 = vpop.eup %1678 }
 0x2a4   :  { %v1206_v30 = vadd.f32 1.0, %v1679_v14 }
 0x2a6   :  { %v3160_v35 = vmul.f32 %v1206_v30, %v1158_v47  ;;  %v1681_v20 = vpop.eup %1680 }
 0x2a7   :  { %v1683_v39 = vpop.eup %1682  ;;  %v1207_v8 = vadd.f32 1.0, %v1681_v20 }
 0x2a8   :  { %v1234_v51 = vadd.f32 %v3160_v35, %v3158_v19  ;;  %v1208_v21 = vadd.f32 1.0, %v1683_v39 }
 0x2a9   :  { %v3170_v36 = vmul.f32 %v1207_v8, %v1159_v42 }
 0x2aa   :  { %v1685_v57 = vpop.eup %1684  ;;  %1235 = vadd.xlane.f32.xlu1 %v1234_v51  ;;  %v3172_v13 = vmul.f32 %v1208_v21, %v1160_v32  ;;  %v1288_v24 = vpop.permute.xlu1 %1287 }
 0x2ab   :  { %v1687_v17 = vpop.eup %1686  ;;  %v1203_v11 = vadd.f32 1.0, %v1685_v57 }
 0x2ac   :  { %v1204_v5 = vadd.f32 1.0, %v1687_v17  ;;  %v1246_v27 = vadd.f32 %v3172_v13, %v3170_v36 }
 0x2ad   :  { %v3164_v37 = vmul.f32 %v1203_v11, %v1155_v1 }
 0x2ae   :  { %v3166_v15 = vmul.f32 %v1204_v5, %v1156_v3 }
 0x2b0   :  { %v1243_v29 = vadd.f32 %v3166_v15, %v3164_v37 }
 0x2b2   :  { %1244 = vadd.xlane.f32.xlu0 %v1243_v29 }
 0x2b6   :  { %1247 = vadd.xlane.f32.xlu0 %v1246_v27 }
 0x2bb   :  { %1328 = vperm.xlu1 %1617, %v2950_v53  }
 0x2bf   :  { %1618 = vset.pattern.permute.xlu1 %v3423_v33 }
 0x2cc   :  { %1299 = vperm.xlu0 %1616, %v2950_v53   ;;  %v1263_v53 = vadd.s32 24, %v1260_v48 }
 0x2ce   :  { %vm1322_vm5 = vcmp.lt.s32.totalorder %v1263_v53, 31 }
 0x30a   :  { %v1227_v0 = vpop.xlane.xlu0 %1226 }
 0x30f   :  { %v1239_v16 = vpop.xlane.xlu0 %1238 }
 0x310   :  { %v1250_v46 = vsel %vm1249_vm2, %v1227_v0, %v1239_v16 }
 0x311   :  { %v1254_v49 = vmul.f32 0.00390625, %v1250_v46 }
 0x313   :  { %v1264_v12 = vrot.slane %v1254_v49, 7  ;;  %v1310_v52 = vrot.slane %v1254_v49, 1 }
 0x31d   :  { %v1242_v62 = vpop.xlane.xlu0 %1241 }
 0x31e   :  { %v1230_v9 = vpop.xlane.xlu1 %1229 }
 0x31f   :  { %v1251_v55 = vsel %vm1249_vm2, %v1230_v9, %v1242_v62 }
 0x320   :  { %v1255_v56 = vmul.f32 0.00390625, %v1251_v55 }
 0x322   :  { %v1265_v25 = vrot.slane %v1255_v56, 7  ;;  %v1311_v43 = vrot.slane %v1255_v56, 1 }
 0x324   :  { %v1271_v14 = vsel %vm1268_vm3, %v1264_v12, %v1265_v25 }
 0x325   :  { %v1291_v57 = vmul.f32 %v1288_v24, %v1271_v14 }
 0x32e   :  { %v1233_v54 = vpop.xlane.xlu1 %1232 }
 0x337   :  { %v1236_v4 = vpop.xlane.xlu1 %1235 }
 0x33b   :  { %v1329_v17 = vpop.permute.xlu1 %1328 }
 0x33f   :  { %v1245_v22 = vpop.xlane.xlu0 %1244 }
 0x340   :  { %v1252_v7 = vsel %vm1249_vm2, %v1233_v54, %v1245_v22 }
 0x341   :  { %v1256_v63 = vmul.f32 0.00390625, %v1252_v7 }
 0x343   :  { %v1248_v50 = vpop.xlane.xlu0 %1247  ;;  %v1266_v41 = vrot.slane %v1256_v63, 7  ;;  %v1312_v61 = vrot.slane %v1256_v63, 1 }
 0x344   :  { %v1253_v45 = vsel %vm1249_vm2, %v1236_v4, %v1248_v50  ;;  %v1317_v50 = vsel %vm1314_vm4, %v1310_v52, %v1311_v43 }
 0x345   :  { %v1257_v6 = vmul.f32 0.00390625, %v1253_v45  ;;  %v1316_v30 = vsel %vm1314_vm4, %v1311_v43, %v1312_v61  ;;  %v1270_v20 = vsel %vm1268_vm3, %v1265_v25, %v1266_v41  ;;  %v1331_v25 = vmul.f32 %v1329_v17, %v1317_v50 }
 0x346   :  { %v1292_v21 = vmul.f32 %v1288_v24, %v1270_v20  ;;  %v1332_v42 = vmul.f32 %v1329_v17, %v1316_v30 }
 0x347   :  { %v1267_v40 = vrot.slane %v1257_v6, 7  ;;  %v1313_v38 = vrot.slane %v1257_v6, 1 }
 0x349   :  { %v1318_v34 = vsel %vm1314_vm4, %v1313_v38, %v1310_v52  ;;  %v1269_v47 = vsel %vm1268_vm3, %v1266_v41, %v1267_v40  ;;  %v1272_v8 = vsel %vm1268_vm3, %v1267_v40, %v1264_v12  ;;  %v1315_v32 = vsel %vm1314_vm4, %v1312_v61, %v1313_v38 }
 0x34a   :  { %v1326_v51 = vsel %vm1322_vm5, %v1318_v34, 0.0  ;;  %v1293_v1 = vmul.f32 %v1288_v24, %v1269_v47  ;;  %v1277_v62 = vsel %vm1273_vm6, %v1272_v8, 0.0  ;;  %v1333_v46 = vmul.f32 %v1329_v17, %v1315_v32 }
 0x34b   :  { %v1300_v39 = vpop.permute.xlu0 %1299  ;;  %v1334_v0 = vmul.f32 %v1329_v17, %v1326_v51  ;;  %v1290_v22 = vmul.f32 %v1288_v24, %v1277_v62  ;;  %v3425_v52 = vmov 1  }
 0x34c   :  { %v1303_v11 = vmul.f32 %v1300_v39, %v1255_v56  ;;  %v1304_v3 = vmul.f32 %v1300_v39, %v1256_v63  ;;  %v1305_v5 = vmul.f32 %v1300_v39, %v1257_v6  ;;  %v1302_v56 = vmul.f32 %v1300_v39, %v1254_v49 }
 0x34e   :  { %v1307_v29 = vadd.f32 %v1303_v11, %v1291_v57  ;;  %v1309_v27 = vadd.f32 %v1305_v5, %v1293_v1  ;;  %v1308_v16 = vadd.f32 %v1304_v3, %v1292_v21  ;;  %v1306_v63 = vadd.f32 %v1302_v56, %v1290_v22 }
 0x350   :  { %v1336_v9 = vadd.f32 %v1332_v42, %v1307_v29  ;;  %v1338_v55 = vadd.f32 %v1334_v0, %v1309_v27  ;;  %v1337_v7 = vadd.f32 %v1333_v46, %v1308_v16  ;;  %v1335_v53 = vadd.f32 %v1331_v25, %v1306_v63 }
 0x352   :  { %v1565_v54 = vmul.f32 -1.442695, %v1336_v9  ;;  %v1567_v28 = vmul.f32 -1.442695, %v1338_v55  ;;  %v1566_v4 = vmul.f32 -1.442695, %v1337_v7 }
 0x353   :  { %v1564_v6 = vmul.f32 -1.442695, %v1335_v53 }
 0x354   :  { %1688 = vpow2.f32 %v1565_v54 }
 0x355   :  { %1690 = vpow2.f32 %v1567_v28 }
 0x356   :  { %1692 = vpow2.f32 %v1566_v4 }
 0x35e   :  { %v1689_v45 = vpop.eup %1688 }
 0x35f   :  { %v1352_v12 = vadd.f32 1.0, %v1689_v45  ;;  %v1691_v41 = vpop.eup %1690 }
 0x360   :  { %v1354_v61 = vadd.f32 1.0, %v1691_v41  ;;  %v1693_v24 = vpop.eup %1692 }
 0x361   :  { %1694 = vrcp.f32 %v1352_v12  ;;  %v1353_v49 = vadd.f32 1.0, %v1693_v24 }
 0x362   :  { %1696 = vpow2.f32 %v1564_v6 }
 0x363   :  { %1698 = vrcp.f32 %v1354_v61  ;;  %v1712_v61 = vld [vmem:[#allocation2] sm:$0xff] }
 0x364   :  { %1700 = vrcp.f32 %v1353_v49 }
 0x36b   :  { %v1695_v40 = vpop.eup %1694 }
 0x36c   :  { %v1697_v38 = vpop.eup %1696  ;;  %1370 = vperm.xlu1 %1618, %v1695_v40  }
 0x36d   :  { %v1699_v14 = vpop.eup %1698  ;;  %v1351_v48 = vadd.f32 1.0, %v1697_v38 }
 0x36e   :  { %1404 = vperm.xlu0 %1616, %v1699_v14   ;;  %v1701_v43 = vpop.eup %1700 }
 0x36f   :  { %1702 = vrcp.f32 %v1351_v48 }
 0x370   :  { %1619 = vset.pattern.permute.xlu1 %v3425_v52 }
 0x371   :  { %1396 = vperm.xlu1 %1619, %v1695_v40   ;;  %v1713_v40 = vld [vmem:[#allocation2 + $0x8] sm:$0xff] }
 0x375   :  { %1620 = vset.pattern.permute.xlu1 %v3423_v33 }
 0x376   :  { %1375 = vperm.xlu1 %1620, %v1701_v43  }
 0x379   :  { %v1703_v34 = vpop.eup %1702 }
 0x37a   :  { %1380 = vperm.xlu1 %1620, %v1699_v14  }
 0x37e   :  { %1365 = vperm.xlu1 %1620, %v1703_v34  }
 0x382   :  { %1621 = vset.pattern.permute.xlu1 %v3425_v52 }
 0x383   :  { %1392 = vperm.xlu1 %1621, %v1703_v34  }
 0x387   :  { %1400 = vperm.xlu1 %1621, %v1701_v43  }
 0x3eb   :  { %v1371_v47 = vpop.permute.xlu1 %1370 }
 0x3ec   :  { %v1385_v39 = vmul.f32 %v1371_v47, %v3101_v31  ;;  %v1386_v17 = vmul.f32 %v1371_v47, %v3103_v26 }
 0x3ed   :  { %v1405_v29 = vpop.permute.xlu0 %1404 }
 0x3ee   :  { %v1414_v16 = vmul.f32 %v1405_v29, %v3172_v13 }
 0x3f0   :  { %v1397_v30 = vpop.permute.xlu1 %1396 }
 0x3f1   :  { %v1409_v42 = vmul.f32 %v1397_v30, %v3096_v60  ;;  %v1410_v26 = vmul.f32 %v1397_v30, %v3098_v18  ;;  %v1714_v30 = vld [vmem:[#allocation2 + $0x10] sm:$0xff] }
 0x3f5   :  { %v1376_v20 = vpop.permute.xlu1 %1375 }
 0x3f6   :  { %v1388_v3 = vmul.f32 %v1376_v20, %v3154_v2 }
 0x3f9   :  { %v1381_v51 = vpop.permute.xlu1 %1380 }
 0x3fa   :  { %v1390_v1 = vmul.f32 %v1381_v51, %v3160_v35  ;;  %v1389_v21 = vmul.f32 %v1381_v51, %v3158_v19  ;;  %v1387_v35 = vmul.f32 %v1376_v20, %v3152_v58  ;;  %v1413_v19 = vmul.f32 %v1405_v29, %v3170_v36  ;;  %v1415_v58 = vld [vmem:[#allocation10] sm:$0xf]  ;;  %v1715_v51 = vld [vmem:[#allocation2 + $0x18] sm:$0xff] }
 0x3fc   :  { %v1421_v32 = vpack.c.bf16 %v1390_v1, %v1388_v3  ;;  %v1420_v2 = vpack.c.bf16 %v1389_v21, %v1387_v35 }
 0x3fd   :  { %v1366_v57 = vpop.permute.xlu1 %1365 }
 0x3fe   :  { %v1383_v33 = vmul.f32 %v1366_v57, %v3043_v44  ;;  %v1384_v11 = vmul.f32 %v1366_v57, %v3045_v23 }
 0x400   :  { %v1416_v5 = vpack.c.bf16 %v1385_v39, %v1383_v33  ;;  %v1417_v8 = vpack.c.bf16 %v1386_v17, %v1384_v11 }
 0x402   :  { %1428 = vmatprep.subr.bf16.mxu0 %v1417_v8  ;;  %v1393_v31 = vpop.permute.xlu1 %1392 }
 0x403   :  { %v1407_v44 = vmul.f32 %v1393_v31, %v3057_v10  ;;  %v1408_v23 = vmul.f32 %v1393_v31, %v3062_v59  ;;  %1429 = vmatpush1.bf16.msra.mxu0 %v1416_v5 }
 0x404   :  { %1430 = vmatprep.subr.bf16.mxu0 %v1421_v32 }
 0x405   :  { %v1418_v27 = vpack.c.bf16 %v1409_v42, %v1407_v44  ;;  %v1419_v0 = vpack.c.bf16 %v1410_v26, %v1408_v23 }
 0x406   :  { %v1401_v60 = vpop.permute.xlu1 %1400 }
 0x407   :  { %v1411_v62 = vmul.f32 %v1401_v60, %v3164_v37  ;;  %v1412_v18 = vmul.f32 %v1401_v60, %v3166_v15  ;;  %1431 = vmatpush1.bf16.msra.mxu0 %v1420_v2  ;;  %1469 = vmatprep.subr.bf16.mxu1 %v1419_v0 }
 0x408   :  { %1470 = vmatpush1.bf16.msra.mxu1 %v1418_v27 }
 0x409   :  { %v1422_v10 = vpack.c.bf16 %v1413_v19, %v1411_v62  ;;  %v1423_v59 = vpack.c.bf16 %v1414_v16, %v1412_v18 }
 0x40a   :  { %1568 = vmatmul.mubr.msk.bf16.vlgmr.msra.gmra.mrb[8].mxu0 %vm1424_vm7, %v1415_v58 }
 0x40b   :  { %1471 = vmatprep.subr.bf16.mxu1 %v1423_v59 }
 0x40c   :  { %1472 = vmatpush1.bf16.msra.mxu1 %v1422_v10 }
 0x40f   :  { %1569 = vmatmul.mubr.msk.bf16.vlgmr.msra.gmra.mrb[8].mxu1 %vm1424_vm7, %v1415_v58 }
 0x4dd   :  { %v1462_v9 = vpop.f32.mrb[8].mxu0 }
 0x4de   :  { %v1514_v36 = vmul.f32 0.70710677, %v1462_v9  ;;  %v1464_v55 = vpop.f32.mrb[9].mxu0  ;;  %v1510_v50 = vmul.f32 0.5, %v1462_v9 }
 0x4df   :  { %v1515_v46 = vmul.f32 0.70710677, %v1464_v55  ;;  %v1466_v13 = vpop.f32.mrb[10].mxu0  ;;  %v1511_v53 = vmul.f32 0.5, %v1464_v55 }
 0x4e0   :  { %1704 = verf.f32 %v1514_v36  ;;  %v1467_v37 = vpop.f32.mrb[11].mxu0 }
 0x4e1   :  { %1706 = verf.f32 %v1515_v46 }
 0x4e2   :  { %v1503_v15 = vpop.f32.mrb[8].mxu1 }
 0x4e3   :  { %v1516_v54 = vmul.f32 0.70710677, %v1503_v15  ;;  %v1505_v22 = vpop.f32.mrb[9].mxu1  ;;  %v1512_v14 = vmul.f32 0.5, %v1503_v15 }
 0x4e4   :  { %v1517_v56 = vmul.f32 0.70710677, %v1505_v22  ;;  %v1507_v7 = vpop.f32.mrb[10].mxu1  ;;  %v1513_v52 = vmul.f32 0.5, %v1505_v22 }
 0x4e5   :  { %1708 = verf.f32 %v1516_v54  ;;  %v1508_v28 = vpop.f32.mrb[11].mxu1 }
 0x4e6   :  { %1710 = verf.f32 %v1517_v56 }
 0x4ea   :  { %v1705_v63 = vpop.eup %1704 }
 0x4eb   :  { %v1707_v4 = vpop.eup %1706  ;;  %v1522_v25 = vadd.f32 1.0, %v1705_v63 }
 0x4ec   :  { %v1523_v45 = vadd.f32 1.0, %v1707_v4 }
 0x4ed   :  { %v1526_v6 = vmul.f32 %v1522_v25, %v1510_v50 }
 0x4ee   :  { %v1527_v12 = vmul.f32 %v1523_v45, %v1511_v53 }
 0x4ef   :  { %v1709_v41 = vpop.eup %1708  ;;  %v1530_v24 = vadd.f32 %v1712_v61, %v1526_v6 }
 0x4f0   :  { %v1711_v49 = vpop.eup %1710  ;;  %v1531_v38 = vadd.f32 %v1713_v40, %v1527_v12  ;;  %v1524_v48 = vadd.f32 1.0, %v1709_v41 }
 0x4f1   :  { %1534 = vst [vmem:[#allocation11] sm:$0xff] %v1530_v24  ;;  %v1525_v43 = vadd.f32 1.0, %v1711_v49 }
 0x4f2   :  { %1535 = vst [vmem:[#allocation11 + $0x8] sm:$0xff] %v1531_v38  ;;  %v1528_v34 = vmul.f32 %v1524_v48, %v1512_v14 }
 0x4f3   :  { %v1529_v47 = vmul.f32 %v1525_v43, %v1513_v52 }
 0x4f4   :  { %v1532_v20 = vadd.f32 %v1714_v30, %v1528_v34 }
 0x4f5   :  { %v1533_v39 = vadd.f32 %v1715_v51, %v1529_v47 }
 0x4f6   :  { %1536 = vst [vmem:[#allocation11 + $0x10] sm:$0xff] %v1532_v20 }
 0x4f7   :  { %1537 = vst [vmem:[#allocation11 + $0x18] sm:$0xff] %v1533_v39 }
 0x4f8   :  { %1837 = shalt.err (!%p1834_p2)
}
 0x4f9   :  { %s1838_s11 = scalar_lea.hbm %s3224_s5, 512 }
 0x4fa   :  { %p1839_p3 = scmp.ne.s32.totalorder %s3224_s5, %s1838_s11  ;;  %p1842_p4 = scmp.lt.u32.totalorder %s1838_s11, %s3224_s5 }
 0x4fc   :  { %p1844_p5 = pnand %p1842_p4, %p1839_p3 }
 0x4fe   :  { %1847 = shalt.err (!%p1844_p5)
}
 0x4ff   :  { %1547 = dma.vmem_to_hbm [thread:$0]  %s1545_s6, 512, %s3224_s5, [#allocation4]  }
 0x500   :  { %1854 = dma.done.wait [#allocation4], 512  }
 0x501   :  { %1855 = vsyncadd [#allocation4], 4294966784 }
 0x502   :  { %1551 = vsyncpa [#allocation3], 1 }
 0x503   :  { %1552 = vsyncpa [#allocation6], 1 }
 0x504   :  { %1553 = vsyncpa [#allocation9], 1 }
 0x505   :  { %1554 = vsyncpa [#allocation4], 1 }

</bundles_post_ra>
